<compile_context>
chip_gen: v6e
topology: v6e:2x2x1
jax: 0.10.0
libtpu: 0.0.40
codegen_flags: <defaults>
</compile_context>

<pallas_src>
import functools

import jax
import jax.numpy as jnp
from jax.experimental import pallas as pl
from jax.experimental.pallas import tpu as pltpu

ACT_LEAKY = 1   # LeakyReLU(0.2)
ACT_RELU = 2

BN_EPS = 1e-5

# Per-grid-step lane-column budget.  Live working set per column is roughly
# 16*E bytes for the E-channel layers (x f32 + h + 3-tap im2col + f32 acc) plus
# ~20*Fp bytes for the decoder head's two phase streams; at the module default
# E=256 that is ~4.5 KiB/column, so 2048 columns ~ 9 MiB of activations —
# comfortably inside v7x's 64 MiB physical VMEM with double-buffered I/O blocks,
# while giving >= 2 grid steps (both v7x TensorCores) at production batch*T.
_MAX_LANE_COLS = 2048


# --------------------------------------------------------------------------
# Fused Pallas kernel: entire decoder stack for one batch chunk.
# --------------------------------------------------------------------------
def _fused_decoder_kernel(x_ref, w3_ref, we_ref, wo_ref, w5e_ref, w5o_ref,
                          pe_ref, pf_ref, oe_ref, oo_ref, *, T, act_dtype):
    """Shapes (Bc = batch elements per grid step, L = Bc*T, Fp = padded F):
       x_ref  : (E, L)     f32   batch-major lane packing (column = b*T + t)
       w3_ref : (3, E, 3E) bf16  im2col weights of the three k3 E->E convs
       we_ref : (Fp, 3E)   bf16  even-phase weights of the transposed conv
       wo_ref : (Fp, 4E)   bf16  odd-phase  weights of the transposed conv
       w5e_ref: (Fp, 7Fp)  bf16  even-phase weights of the final k7 conv
       w5o_ref: (Fp, 7Fp)  bf16  odd-phase  weights of the final k7 conv
       pe_ref : (E, 9)     f32   [bias, bn_scale, bn_shift] x 3 E-channel layers
       pf_ref : (Fp, 4)    f32   [tconv bias, bn_scale, bn_shift, final bias]
       oe_ref : (Fp, L)    f32   even time phase of the output
       oo_ref : (Fp, L)    f32   odd  time phase of the output
    """
    _, L = x_ref.shape

    # Per-segment (per batch element) time index of each lane + segment-edge
    # masks for every tap offset used below (zero padding folded into the kernel).
    t_idx = jax.lax.broadcasted_iota(jnp.int32, (1, L), 1) % T
    masks = {d: jnp.logical_and(t_idx + d >= 0, t_idx + d < T)
             for d in (-2, -1, 1, 2)}

    def shift_cols(h, shifts):
        # im2col: shifted, segment-edge zero-masked copies of h.
        cols = []
        for d in shifts:
            if d == 0:
                cols.append(h)
            else:
                shifted = jnp.roll(h, -d, axis=1)       # shifted[:, p] = h[:, p + d]
                cols.append(jnp.where(masks[d], shifted, jnp.zeros_like(shifted)))
        return cols

    def mxu(w2d, cols):
        # one lane-dense (Cout, K*Cin) x (K*Cin, L) bf16 MXU matmul, f32 accum
        col = jnp.concatenate(cols, axis=0)
        return jnp.dot(w2d, col.astype(jnp.bfloat16),
                       preferred_element_type=jnp.float32)

    def epilogue(acc, bias, act, scale=None, shift=None):
        acc = acc + bias                                 # conv bias (pre-activation)
        if act == ACT_LEAKY:
            acc = jnp.where(acc > 0, acc, 0.2 * acc)
        else:
            acc = jnp.maximum(acc, 0.0)
        if scale is not None:                            # folded BatchNorm (inference)
            acc = acc * scale + shift
        return acc.astype(act_dtype)

    # --- conv1, conv2, decoder's first conv: k3 pad1 + LeakyReLU + BN --------
    h = x_ref[...].astype(act_dtype)
    for l in range(3):
        acc = mxu(w3_ref[l], shift_cols(h, (-1, 0, 1)))
        h = epilogue(acc, pe_ref[:, 3 * l:3 * l + 1], ACT_LEAKY,
                     pe_ref[:, 3 * l + 1:3 * l + 2], pe_ref[:, 3 * l + 2:3 * l + 3])

    # --- ConvTranspose1d(E,F,7,s2,p3,op1) + ReLU + BN, polyphase -------------
    #   y[2u]   = W5·h[u-1] + W3·h[u] + W1·h[u+1]
    #   y[2u+1] = W6·h[u-1] + W4·h[u] + W2·h[u+1] + W0·h[u+2]
    bt, st, ht = pf_ref[:, 0:1], pf_ref[:, 1:2], pf_ref[:, 2:3]
    y_even = epilogue(mxu(we_ref[...], shift_cols(h, (-1, 0, 1))),
                      bt, ACT_RELU, st, ht)                               # (Fp, L)
    y_odd = epilogue(mxu(wo_ref[...], shift_cols(h, (-1, 0, 1, 2))),
                     bt, ACT_RELU, st, ht)                                # (Fp, L)

    # --- final Conv1d(F,F,7,p=3), polyphase over (y_even, y_odd) -------------
    # out[2u]   = W1·ye[u-1]+W3·ye[u]+W5·ye[u+1] + W0·yo[u-2]+W2·yo[u-1]+W4·yo[u]+W6·yo[u+1]
    # out[2u+1] = W0·ye[u-1]+W2·ye[u]+W4·ye[u+1]+W6·ye[u+2] + W1·yo[u-1]+W3·yo[u]+W5·yo[u+1]
    # The two phase streams never leave polyphase form inside the kernel; the
    # wrapper interleaves them with a cheap reshape (no O(L^2) selection matmul).
    bf = pf_ref[:, 3:4]
    cols_e = shift_cols(y_even, (-1, 0, 1)) + shift_cols(y_odd, (-2, -1, 0, 1))
    cols_o = shift_cols(y_even, (-1, 0, 1, 2)) + shift_cols(y_odd, (-1, 0, 1))
    oe_ref[...] = (mxu(w5e_ref[...], cols_e) + bf).astype(oe_ref.dtype)
    oo_ref[...] = (mxu(w5o_ref[...], cols_o) + bf).astype(oo_ref.dtype)


# --------------------------------------------------------------------------
# Host-side parameter packing (PyTorch layouts -> kernel operands)
# --------------------------------------------------------------------------
def _conv_w2d(w):
    """(Cout, Cin, K) conv weight -> (Cout, K*Cin) bf16 im2col weight."""
    co, ci, k = w.shape
    return jnp.transpose(w, (0, 2, 1)).reshape(co, k * ci).astype(jnp.bfloat16)


def _pad_rows(a, rows):
    return jnp.pad(a, ((0, rows - a.shape[0]),) + ((0, 0),) * (a.ndim - 1))


def pack_params(raw):
    F = raw["dec_conv2"]["w"].shape[0]
    Fp = ((F + 7) // 8) * 8          # sublane-multiple padding -> unmasked stores

    w3 = jnp.stack([_conv_w2d(raw[n]["w"]) for n in ("conv1", "conv2", "dec_conv1")])

    # ConvTranspose1d polyphase taps (layout (E, F, 7) in PyTorch).
    wt = raw["dec_tconv"]["w"]
    w_even = jnp.transpose(wt[:, :, jnp.array([5, 3, 1])], (1, 0, 2))      # (F, E, 3)
    w_odd = jnp.transpose(wt[:, :, jnp.array([6, 4, 2, 0])], (1, 0, 2))    # (F, E, 4)

    # Final Conv1d(F,F,7,p=3), polyphase over the tconv's two phase streams.
    w5 = jnp.pad(raw["dec_conv2"]["w"], ((0, Fp - F), (0, Fp - F), (0, 0)))  # (Fp,Fp,7)
    w5e = _conv_w2d(w5[:, :, jnp.array([1, 3, 5, 0, 2, 4, 6])])            # (Fp, 7Fp)
    w5o = _conv_w2d(w5[:, :, jnp.array([0, 2, 4, 6, 1, 3, 5])])            # (Fp, 7Fp)

    pe = jnp.stack(
        sum([[raw[n]["b"], raw[n]["scale"], raw[n]["shift"]]
             for n in ("conv1", "conv2", "dec_conv1")], []), axis=1)       # (E, 9)
    pf = _pad_rows(
        jnp.stack([raw["dec_tconv"]["b"], raw["dec_tconv"]["scale"],
                   raw["dec_tconv"]["shift"], raw["dec_conv2"]["b"]], axis=1), Fp)

    return dict(w3=w3,
                we=_pad_rows(_conv_w2d(w_even), Fp),
                wo=_pad_rows(_conv_w2d(w_odd), Fp),
                w5e=w5e, w5o=w5o,
                pe=pe.astype(jnp.float32), pf=pf.astype(jnp.float32))


# --------------------------------------------------------------------------
# Generation-aware defaults
# --------------------------------------------------------------------------
def _default_act_dtype():
    # bf16 inter-layer activations on chips with native bf16 VPUs (v6e/v7x);
    # f32 on v5-and-older (bf16 elementwise would be silently widened there).
    try:
        kind = jax.devices()[0].device_kind.lower()
    except Exception:
        return jnp.float32
    if any(v in kind for v in ("v2", "v3", "v4", "v5")):
        return jnp.float32
    return jnp.bfloat16


def _auto_batch_block(B, T):
    if B * T <= _MAX_LANE_COLS:
        return B                                        # single step, no overhead
    for bc in range(B, 0, -1):                          # largest chunk within budget
        if B % bc == 0 and (bc * T) % 128 == 0 and bc * T <= _MAX_LANE_COLS:
            return bc
    for bc in range(1, B + 1):                          # smallest lane-aligned chunk
        if B % bc == 0 and (bc * T) % 128 == 0:
            return bc
    # TODO(synk): if T alone exceeds the budget, a time-tiled halo grid is needed.
    return B


# --------------------------------------------------------------------------
# Forward wrapper (single pallas_call for the whole network)
# --------------------------------------------------------------------------
def decoder_forward(x, packed, feature_out_dim, *, batch_block=None, act_dtype=None):
    """x: (B, E, T) f32 embedding -> (B, F, 2T) f32 pose sequence."""
    B, E, T = x.shape
    F = feature_out_dim
    Fp = packed["pf"].shape[0]
    if act_dtype is None:
        act_dtype = _default_act_dtype()
    Bc = _auto_batch_block(B, T) if batch_block is None else batch_block
    assert B % Bc == 0 and (Bc == B or (Bc * T) % 128 == 0), (B, Bc, T)
    L = Bc * T
    nb = B // Bc

    # pack batch onto the lane (time) axis: (B, E, T) -> (E, B*T), column = b*T + t
    x2d = jnp.transpose(x, (1, 0, 2)).reshape(E, B * T)

    kernel = functools.partial(_fused_decoder_kernel, T=T, act_dtype=act_dtype)
    oe, oo = pl.pallas_call(
        kernel,
        out_shape=(jax.ShapeDtypeStruct((Fp, B * T), jnp.float32),
                   jax.ShapeDtypeStruct((Fp, B * T), jnp.float32)),
        grid=(nb,),
        in_specs=[
            pl.BlockSpec((E, L), lambda i: (0, i)),
            pl.BlockSpec(packed["w3"].shape, lambda i: (0, 0, 0)),
            pl.BlockSpec(packed["we"].shape, lambda i: (0, 0)),
            pl.BlockSpec(packed["wo"].shape, lambda i: (0, 0)),
            pl.BlockSpec(packed["w5e"].shape, lambda i: (0, 0)),
            pl.BlockSpec(packed["w5o"].shape, lambda i: (0, 0)),
            pl.BlockSpec(packed["pe"].shape, lambda i: (0, 0)),
            pl.BlockSpec(packed["pf"].shape, lambda i: (0, 0)),
        ],
        out_specs=(pl.BlockSpec((Fp, L), lambda i: (0, i)),
                   pl.BlockSpec((Fp, L), lambda i: (0, i))),
        compiler_params=pltpu.CompilerParams(
            dimension_semantics=("parallel",),
            vmem_limit_bytes=48 * 1024 * 1024),
    )(x2d, packed["w3"], packed["we"], packed["wo"], packed["w5e"],
      packed["w5o"], packed["pe"], packed["pf"])

    # interleave the two phase streams along time and unpack the batch axis
    out = jnp.stack([oe.reshape(Fp, B, T), oo.reshape(Fp, B, T)], axis=-1)
    out = out.reshape(Fp, B, 2 * T)                      # out[:, b, 2u+p]
    return jnp.transpose(out, (1, 0, 2))[:, :F, :]


# --------------------------------------------------------------------------
# Deterministic parameter init (eval-mode: BN running mean=0, var=1)
# --------------------------------------------------------------------------
def init_params(key, embed_size, feature_out_dim):
    E, F = embed_size, feature_out_dim

    def conv_init(k, cout, cin, ksz, with_bn, transpose=False):
        k1, k2, k3, k4 = jax.random.split(k, 4)
        wshape = (cin, cout, ksz) if transpose else (cout, cin, ksz)
        w = jax.random.normal(k1, wshape, jnp.float32) / jnp.sqrt(jnp.float32(cin * ksz))
        b = 0.1 * jax.random.normal(k2, (cout,), jnp.float32)
        if with_bn:
            gamma = 1.0 + 0.1 * jax.random.normal(k3, (cout,), jnp.float32)
            beta = 0.1 * jax.random.normal(k4, (cout,), jnp.float32)
            scale = gamma / jnp.sqrt(jnp.float32(1.0 + BN_EPS))
            shift = beta
        else:
            scale = jnp.ones((cout,), jnp.float32)
            shift = jnp.zeros((cout,), jnp.float32)
        return dict(w=w, b=b, scale=scale, shift=shift)

    keys = jax.random.split(key, 5)
    return {
        "conv1": conv_init(keys[0], E, E, 3, True),
        "conv2": conv_init(keys[1], E, E, 3, True),
        "dec_conv1": conv_init(keys[2], E, E, 3, True),
        "dec_tconv": conv_init(keys[3], F, E, 7, True, transpose=True),
        "dec_conv2": conv_init(keys[4], F, F, 7, False),
    }


# --------------------------------------------------------------------------
# Pure-JAX f32 reference of the same eval-mode forward (correctness check)
# --------------------------------------------------------------------------
def reference_forward(x, raw):
    dn = ("NCH", "OIH", "NCH")

    def conv1d(h, w, b, pad):
        y = jax.lax.conv_general_dilated(h, w, (1,), [(pad, pad)],
                                         dimension_numbers=dn)
        return y + b[None, :, None]

    def bn(h, scale, shift):
        return h * scale[None, :, None] + shift[None, :, None]

    h = x
    for n in ("conv1", "conv2", "dec_conv1"):
        p = raw[n]
        h = conv1d(h, p["w"], p["b"], 1)
        h = jnp.where(h > 0, h, 0.2 * h)
        h = bn(h, p["scale"], p["shift"])

    p = raw["dec_tconv"]
    w_flip = jnp.transpose(p["w"][:, :, ::-1], (1, 0, 2))    # (F, E, 7)
    y = jax.lax.conv_general_dilated(h, w_flip, (1,), [(3, 4)],
                                     lhs_dilation=(2,), dimension_numbers=dn)
    y = y + p["b"][None, :, None]
    y = bn(jnp.maximum(y, 0.0), p["scale"], p["shift"])

    p = raw["dec_conv2"]
    return conv1d(y, p["w"], p["b"], 3)


# --------------------------------------------------------------------------
if __name__ == "__main__":
    B = 2
    T = 16
    embed_size = 32          # module default_size is 256; kept small for the test
    feature_out_dim = 6

    key = jax.random.PRNGKey(0)
    kx, kp = jax.random.split(key)
    x = jax.random.normal(kx, (B, embed_size, T), jnp.float32)
    raw = init_params(kp, embed_size, feature_out_dim)
    packed = pack_params(raw)

    fwd = jax.jit(decoder_forward, static_argnums=(2,))
    out = fwd(x, packed, feature_out_dim)
    out = jax.block_until_ready(out)
    assert out.shape == (B, feature_out_dim, 2 * T), out.shape
    assert bool(jnp.all(jnp.isfinite(out)))

    ref = reference_forward(x, raw)
    err = float(jnp.max(jnp.abs(out - ref)) / (jnp.max(jnp.abs(ref)) + 1e-6))
    assert err < 5e-2, f"mismatch vs f32 reference: rel-max-err={err:.4f}"

    print("KERNEL_OK")
</pallas_src>

<mosaic_0001>
module attributes {stable_mosaic.version = 11 : i64} {
  func.func @_fused_decoder_kernel(%arg0: i32, %arg1: memref<32x32xf32, #tpu.memory_space<vmem>>, %arg2: memref<3x32x96xbf16, #tpu.memory_space<vmem>>, %arg3: memref<8x96xbf16, #tpu.memory_space<vmem>>, %arg4: memref<8x128xbf16, #tpu.memory_space<vmem>>, %arg5: memref<8x56xbf16, #tpu.memory_space<vmem>>, %arg6: memref<8x56xbf16, #tpu.memory_space<vmem>>, %arg7: memref<32x9xf32, #tpu.memory_space<vmem>>, %arg8: memref<8x4xf32, #tpu.memory_space<vmem>>, %arg9: memref<8x32xf32, #tpu.memory_space<vmem>>, %arg10: memref<8x32xf32, #tpu.memory_space<vmem>>) attributes {dimension_semantics = [#tpu.dimension_semantics<parallel>], iteration_bounds = array<i64: 1>, scalar_prefetch = 0 : i64, scratch_operands = 0 : i64, tpu.core_type = #tpu.core_type<tc>, window_params = [{transform_indices = @transform_0, window_bounds = array<i64: 32, 32>}, {pipeline_mode = #tpu.pipeline_mode<synchronous>, transform_indices = @transform_1, window_bounds = array<i64: 3, 32, 96>}, {pipeline_mode = #tpu.pipeline_mode<synchronous>, transform_indices = @transform_2, window_bounds = array<i64: 8, 96>}, {pipeline_mode = #tpu.pipeline_mode<synchronous>, transform_indices = @transform_3, window_bounds = array<i64: 8, 128>}, {pipeline_mode = #tpu.pipeline_mode<synchronous>, transform_indices = @transform_4, window_bounds = array<i64: 8, 56>}, {pipeline_mode = #tpu.pipeline_mode<synchronous>, transform_indices = @transform_5, window_bounds = array<i64: 8, 56>}, {pipeline_mode = #tpu.pipeline_mode<synchronous>, transform_indices = @transform_6, window_bounds = array<i64: 32, 9>}, {pipeline_mode = #tpu.pipeline_mode<synchronous>, transform_indices = @transform_7, window_bounds = array<i64: 8, 4>}, {transform_indices = @transform_8, window_bounds = array<i64: 8, 32>}, {transform_indices = @transform_9, window_bounds = array<i64: 8, 32>}]} {
    %0 = tpu.iota {dimensions = array<i32: 1>} : vector<1x32xi32>
    %c16_i32 = arith.constant 16 : i32
    %c0_i32 = arith.constant 0 : i32
    %1 = arith.cmpi eq, %c16_i32, %c0_i32 : i32
    %c1_i32 = arith.constant 1 : i32
    %2 = arith.select %1, %c1_i32, %c16_i32 : i32
    %3 = vector.broadcast %2 : i32 to vector<1x32xi32>
    %4 = arith.remsi %0, %3 : vector<1x32xi32>
    %c0_i32_0 = arith.constant 0 : i32
    %5 = vector.broadcast %c0_i32_0 : i32 to vector<1x32xi32>
    %6 = arith.cmpi ne, %4, %5 : vector<1x32xi32>
    %c0_i32_1 = arith.constant 0 : i32
    %7 = vector.broadcast %c0_i32_1 : i32 to vector<1x32xi32>
    %8 = arith.cmpi slt, %4, %7 : vector<1x32xi32>
    %c0_i32_2 = arith.constant 0 : i32
    %9 = arith.cmpi slt, %2, %c0_i32_2 : i32
    %10 = vector.broadcast %9 : i1 to vector<1x32xi1>
    %11 = vector.broadcast %10 : vector<1x32xi1> to vector<1x32xi1>
    %12 = arith.xori %8, %11 : vector<1x32xi1>
    %13 = arith.andi %12, %6 : vector<1x32xi1>
    %14 = vector.broadcast %2 : i32 to vector<1x32xi32>
    %15 = arith.addi %4, %14 : vector<1x32xi32>
    %16 = arith.select %13, %15, %4 : vector<1x32xi1>, vector<1x32xi32>
    %c-2_i32 = arith.constant -2 : i32
    %17 = vector.broadcast %c-2_i32 : i32 to vector<1x32xi32>
    %18 = arith.addi %16, %17 : vector<1x32xi32>
    %c0_i32_3 = arith.constant 0 : i32
    %19 = vector.broadcast %c0_i32_3 : i32 to vector<1x32xi32>
    %20 = arith.cmpi sge, %18, %19 : vector<1x32xi32>
    %c-2_i32_4 = arith.constant -2 : i32
    %21 = vector.broadcast %c-2_i32_4 : i32 to vector<1x32xi32>
    %22 = arith.addi %16, %21 : vector<1x32xi32>
    %c16_i32_5 = arith.constant 16 : i32
    %23 = vector.broadcast %c16_i32_5 : i32 to vector<1x32xi32>
    %24 = arith.cmpi slt, %22, %23 : vector<1x32xi32>
    %25 = arith.andi %20, %24 : vector<1x32xi1>
    %c-1_i32 = arith.constant -1 : i32
    %26 = vector.broadcast %c-1_i32 : i32 to vector<1x32xi32>
    %27 = arith.addi %16, %26 : vector<1x32xi32>
    %c0_i32_6 = arith.constant 0 : i32
    %28 = vector.broadcast %c0_i32_6 : i32 to vector<1x32xi32>
    %29 = arith.cmpi sge, %27, %28 : vector<1x32xi32>
    %c-1_i32_7 = arith.constant -1 : i32
    %30 = vector.broadcast %c-1_i32_7 : i32 to vector<1x32xi32>
    %31 = arith.addi %16, %30 : vector<1x32xi32>
    %c16_i32_8 = arith.constant 16 : i32
    %32 = vector.broadcast %c16_i32_8 : i32 to vector<1x32xi32>
    %33 = arith.cmpi slt, %31, %32 : vector<1x32xi32>
    %34 = arith.andi %29, %33 : vector<1x32xi1>
    %c1_i32_9 = arith.constant 1 : i32
    %35 = vector.broadcast %c1_i32_9 : i32 to vector<1x32xi32>
    %36 = arith.addi %16, %35 : vector<1x32xi32>
    %c0_i32_10 = arith.constant 0 : i32
    %37 = vector.broadcast %c0_i32_10 : i32 to vector<1x32xi32>
    %38 = arith.cmpi sge, %36, %37 : vector<1x32xi32>
    %c1_i32_11 = arith.constant 1 : i32
    %39 = vector.broadcast %c1_i32_11 : i32 to vector<1x32xi32>
    %40 = arith.addi %16, %39 : vector<1x32xi32>
    %c16_i32_12 = arith.constant 16 : i32
    %41 = vector.broadcast %c16_i32_12 : i32 to vector<1x32xi32>
    %42 = arith.cmpi slt, %40, %41 : vector<1x32xi32>
    %43 = arith.andi %38, %42 : vector<1x32xi1>
    %c2_i32 = arith.constant 2 : i32
    %44 = vector.broadcast %c2_i32 : i32 to vector<1x32xi32>
    %45 = arith.addi %16, %44 : vector<1x32xi32>
    %c0_i32_13 = arith.constant 0 : i32
    %46 = vector.broadcast %c0_i32_13 : i32 to vector<1x32xi32>
    %47 = arith.cmpi sge, %45, %46 : vector<1x32xi32>
    %c2_i32_14 = arith.constant 2 : i32
    %48 = vector.broadcast %c2_i32_14 : i32 to vector<1x32xi32>
    %49 = arith.addi %16, %48 : vector<1x32xi32>
    %c16_i32_15 = arith.constant 16 : i32
    %50 = vector.broadcast %c16_i32_15 : i32 to vector<1x32xi32>
    %51 = arith.cmpi slt, %49, %50 : vector<1x32xi32>
    %52 = arith.andi %47, %51 : vector<1x32xi1>
    %c0 = arith.constant 0 : index
    %c0_16 = arith.constant 0 : index
    %53 = vector.load %arg1[%c0, %c0_16] : memref<32x32xf32, #tpu.memory_space<vmem>>, vector<32x32xf32>
    %54 = arith.truncf %53 : vector<32x32xf32> to vector<32x32xbf16>
    %c0_17 = arith.constant 0 : index
    %c0_18 = arith.constant 0 : index
    %c0_19 = arith.constant 0 : index
    %55 = vector.load %arg2[%c0_17, %c0_18, %c0_19] : memref<3x32x96xbf16, #tpu.memory_space<vmem>>, vector<1x32x96xbf16>
    %56 = vector.shape_cast %55 : vector<1x32x96xbf16> to vector<32x96xbf16>
    %57 = vector.extract_strided_slice %54 {offsets = [0, 31], sizes = [32, 1], strides = [1, 1]} : vector<32x32xbf16> to vector<32x1xbf16>
    %58 = vector.extract_strided_slice %54 {offsets = [0, 0], sizes = [32, 31], strides = [1, 1]} : vector<32x32xbf16> to vector<32x31xbf16>
    %59 = tpu.concatenate %57, %58 in 1 : vector<32x1xbf16>, vector<32x31xbf16> -> vector<32x32xbf16>
    %cst = arith.constant 0.000000e+00 : bf16
    %60 = vector.broadcast %cst : bf16 to vector<32x32xbf16>
    %61 = vector.shape_cast %34 : vector<1x32xi1> to vector<1x32xi1>
    %62 = vector.broadcast %61 : vector<1x32xi1> to vector<32x32xi1>
    %63 = arith.select %62, %59, %60 : vector<32x32xi1>, vector<32x32xbf16>
    %64 = vector.extract_strided_slice %54 {offsets = [0, 1], sizes = [32, 31], strides = [1, 1]} : vector<32x32xbf16> to vector<32x31xbf16>
    %65 = vector.extract_strided_slice %54 {offsets = [0, 0], sizes = [32, 1], strides = [1, 1]} : vector<32x32xbf16> to vector<32x1xbf16>
    %66 = tpu.concatenate %64, %65 in 1 : vector<32x31xbf16>, vector<32x1xbf16> -> vector<32x32xbf16>
    %cst_20 = arith.constant 0.000000e+00 : bf16
    %67 = vector.broadcast %cst_20 : bf16 to vector<32x32xbf16>
    %68 = vector.shape_cast %43 : vector<1x32xi1> to vector<1x32xi1>
    %69 = vector.broadcast %68 : vector<1x32xi1> to vector<32x32xi1>
    %70 = arith.select %69, %66, %67 : vector<32x32xi1>, vector<32x32xbf16>
    %71 = tpu.concatenate %63, %54, %70 in 0 : vector<32x32xbf16>, vector<32x32xbf16>, vector<32x32xbf16> -> vector<96x32xbf16>
    %cst_21 = arith.constant dense<0.000000e+00> : vector<32x32xf32>
    %72 = tpu.matmul %56, %71, %cst_21 {dimension_numbers = #tpu.dot_dimension_numbers<[1], [0], [0], [1], [0, 0, 1, 1], [], []>} : vector<32x96xbf16>, vector<96x32xbf16>, vector<32x32xf32> -> vector<32x32xf32>
    %c0_22 = arith.constant 0 : index
    %c0_23 = arith.constant 0 : index
    %73 = vector.load %arg7[%c0_22, %c0_23] : memref<32x9xf32, #tpu.memory_space<vmem>>, vector<32x1xf32>
    %c0_24 = arith.constant 0 : index
    %c1 = arith.constant 1 : index
    %74 = vector.load %arg7[%c0_24, %c1] : memref<32x9xf32, #tpu.memory_space<vmem>>, vector<32x1xf32>
    %c0_25 = arith.constant 0 : index
    %c2 = arith.constant 2 : index
    %75 = vector.load %arg7[%c0_25, %c2] : memref<32x9xf32, #tpu.memory_space<vmem>>, vector<32x1xf32>
    %76 = vector.broadcast %73 : vector<32x1xf32> to vector<32x32xf32>
    %77 = arith.addf %72, %76 : vector<32x32xf32>
    %cst_26 = arith.constant 0.000000e+00 : f32
    %78 = vector.broadcast %cst_26 : f32 to vector<32x32xf32>
    %79 = arith.cmpf ogt, %77, %78 : vector<32x32xf32>
    %cst_27 = arith.constant 2.000000e-01 : f32
    %80 = vector.broadcast %cst_27 : f32 to vector<32x32xf32>
    %81 = arith.mulf %80, %77 : vector<32x32xf32>
    %82 = arith.select %79, %77, %81 : vector<32x32xi1>, vector<32x32xf32>
    %83 = vector.broadcast %74 : vector<32x1xf32> to vector<32x32xf32>
    %84 = arith.mulf %82, %83 : vector<32x32xf32>
    %85 = vector.broadcast %75 : vector<32x1xf32> to vector<32x32xf32>
    %86 = arith.addf %84, %85 : vector<32x32xf32>
    %87 = arith.truncf %86 : vector<32x32xf32> to vector<32x32xbf16>
    %c1_28 = arith.constant 1 : index
    %c0_29 = arith.constant 0 : index
    %c0_30 = arith.constant 0 : index
    %88 = vector.load %arg2[%c1_28, %c0_29, %c0_30] : memref<3x32x96xbf16, #tpu.memory_space<vmem>>, vector<1x32x96xbf16>
    %89 = vector.shape_cast %88 : vector<1x32x96xbf16> to vector<32x96xbf16>
    %90 = vector.extract_strided_slice %87 {offsets = [0, 31], sizes = [32, 1], strides = [1, 1]} : vector<32x32xbf16> to vector<32x1xbf16>
    %91 = vector.extract_strided_slice %87 {offsets = [0, 0], sizes = [32, 31], strides = [1, 1]} : vector<32x32xbf16> to vector<32x31xbf16>
    %92 = tpu.concatenate %90, %91 in 1 : vector<32x1xbf16>, vector<32x31xbf16> -> vector<32x32xbf16>
    %cst_31 = arith.constant 0.000000e+00 : bf16
    %93 = vector.broadcast %cst_31 : bf16 to vector<32x32xbf16>
    %94 = vector.shape_cast %34 : vector<1x32xi1> to vector<1x32xi1>
    %95 = vector.broadcast %94 : vector<1x32xi1> to vector<32x32xi1>
    %96 = arith.select %95, %92, %93 : vector<32x32xi1>, vector<32x32xbf16>
    %97 = vector.extract_strided_slice %87 {offsets = [0, 1], sizes = [32, 31], strides = [1, 1]} : vector<32x32xbf16> to vector<32x31xbf16>
    %98 = vector.extract_strided_slice %87 {offsets = [0, 0], sizes = [32, 1], strides = [1, 1]} : vector<32x32xbf16> to vector<32x1xbf16>
    %99 = tpu.concatenate %97, %98 in 1 : vector<32x31xbf16>, vector<32x1xbf16> -> vector<32x32xbf16>
    %cst_32 = arith.constant 0.000000e+00 : bf16
    %100 = vector.broadcast %cst_32 : bf16 to vector<32x32xbf16>
    %101 = vector.shape_cast %43 : vector<1x32xi1> to vector<1x32xi1>
    %102 = vector.broadcast %101 : vector<1x32xi1> to vector<32x32xi1>
    %103 = arith.select %102, %99, %100 : vector<32x32xi1>, vector<32x32xbf16>
    %104 = tpu.concatenate %96, %87, %103 in 0 : vector<32x32xbf16>, vector<32x32xbf16>, vector<32x32xbf16> -> vector<96x32xbf16>
    %cst_33 = arith.constant dense<0.000000e+00> : vector<32x32xf32>
    %105 = tpu.matmul %89, %104, %cst_33 {dimension_numbers = #tpu.dot_dimension_numbers<[1], [0], [0], [1], [0, 0, 1, 1], [], []>} : vector<32x96xbf16>, vector<96x32xbf16>, vector<32x32xf32> -> vector<32x32xf32>
    %c0_34 = arith.constant 0 : index
    %c3 = arith.constant 3 : index
    %106 = vector.load %arg7[%c0_34, %c3] : memref<32x9xf32, #tpu.memory_space<vmem>>, vector<32x1xf32>
    %c0_35 = arith.constant 0 : index
    %c4 = arith.constant 4 : index
    %107 = vector.load %arg7[%c0_35, %c4] : memref<32x9xf32, #tpu.memory_space<vmem>>, vector<32x1xf32>
    %c0_36 = arith.constant 0 : index
    %c5 = arith.constant 5 : index
    %108 = vector.load %arg7[%c0_36, %c5] : memref<32x9xf32, #tpu.memory_space<vmem>>, vector<32x1xf32>
    %109 = vector.broadcast %106 : vector<32x1xf32> to vector<32x32xf32>
    %110 = arith.addf %105, %109 : vector<32x32xf32>
    %cst_37 = arith.constant 0.000000e+00 : f32
    %111 = vector.broadcast %cst_37 : f32 to vector<32x32xf32>
    %112 = arith.cmpf ogt, %110, %111 : vector<32x32xf32>
    %cst_38 = arith.constant 2.000000e-01 : f32
    %113 = vector.broadcast %cst_38 : f32 to vector<32x32xf32>
    %114 = arith.mulf %113, %110 : vector<32x32xf32>
    %115 = arith.select %112, %110, %114 : vector<32x32xi1>, vector<32x32xf32>
    %116 = vector.broadcast %107 : vector<32x1xf32> to vector<32x32xf32>
    %117 = arith.mulf %115, %116 : vector<32x32xf32>
    %118 = vector.broadcast %108 : vector<32x1xf32> to vector<32x32xf32>
    %119 = arith.addf %117, %118 : vector<32x32xf32>
    %120 = arith.truncf %119 : vector<32x32xf32> to vector<32x32xbf16>
    %c2_39 = arith.constant 2 : index
    %c0_40 = arith.constant 0 : index
    %c0_41 = arith.constant 0 : index
    %121 = vector.load %arg2[%c2_39, %c0_40, %c0_41] : memref<3x32x96xbf16, #tpu.memory_space<vmem>>, vector<1x32x96xbf16>
    %122 = vector.shape_cast %121 : vector<1x32x96xbf16> to vector<32x96xbf16>
    %123 = vector.extract_strided_slice %120 {offsets = [0, 31], sizes = [32, 1], strides = [1, 1]} : vector<32x32xbf16> to vector<32x1xbf16>
    %124 = vector.extract_strided_slice %120 {offsets = [0, 0], sizes = [32, 31], strides = [1, 1]} : vector<32x32xbf16> to vector<32x31xbf16>
    %125 = tpu.concatenate %123, %124 in 1 : vector<32x1xbf16>, vector<32x31xbf16> -> vector<32x32xbf16>
    %cst_42 = arith.constant 0.000000e+00 : bf16
    %126 = vector.broadcast %cst_42 : bf16 to vector<32x32xbf16>
    %127 = vector.shape_cast %34 : vector<1x32xi1> to vector<1x32xi1>
    %128 = vector.broadcast %127 : vector<1x32xi1> to vector<32x32xi1>
    %129 = arith.select %128, %125, %126 : vector<32x32xi1>, vector<32x32xbf16>
    %130 = vector.extract_strided_slice %120 {offsets = [0, 1], sizes = [32, 31], strides = [1, 1]} : vector<32x32xbf16> to vector<32x31xbf16>
    %131 = vector.extract_strided_slice %120 {offsets = [0, 0], sizes = [32, 1], strides = [1, 1]} : vector<32x32xbf16> to vector<32x1xbf16>
    %132 = tpu.concatenate %130, %131 in 1 : vector<32x31xbf16>, vector<32x1xbf16> -> vector<32x32xbf16>
    %cst_43 = arith.constant 0.000000e+00 : bf16
    %133 = vector.broadcast %cst_43 : bf16 to vector<32x32xbf16>
    %134 = vector.shape_cast %43 : vector<1x32xi1> to vector<1x32xi1>
    %135 = vector.broadcast %134 : vector<1x32xi1> to vector<32x32xi1>
    %136 = arith.select %135, %132, %133 : vector<32x32xi1>, vector<32x32xbf16>
    %137 = tpu.concatenate %129, %120, %136 in 0 : vector<32x32xbf16>, vector<32x32xbf16>, vector<32x32xbf16> -> vector<96x32xbf16>
    %cst_44 = arith.constant dense<0.000000e+00> : vector<32x32xf32>
    %138 = tpu.matmul %122, %137, %cst_44 {dimension_numbers = #tpu.dot_dimension_numbers<[1], [0], [0], [1], [0, 0, 1, 1], [], []>} : vector<32x96xbf16>, vector<96x32xbf16>, vector<32x32xf32> -> vector<32x32xf32>
    %c0_45 = arith.constant 0 : index
    %c6 = arith.constant 6 : index
    %139 = vector.load %arg7[%c0_45, %c6] : memref<32x9xf32, #tpu.memory_space<vmem>>, vector<32x1xf32>
    %c0_46 = arith.constant 0 : index
    %c7 = arith.constant 7 : index
    %140 = vector.load %arg7[%c0_46, %c7] : memref<32x9xf32, #tpu.memory_space<vmem>>, vector<32x1xf32>
    %c0_47 = arith.constant 0 : index
    %c8 = arith.constant 8 : index
    %141 = vector.load %arg7[%c0_47, %c8] : memref<32x9xf32, #tpu.memory_space<vmem>>, vector<32x1xf32>
    %142 = vector.broadcast %139 : vector<32x1xf32> to vector<32x32xf32>
    %143 = arith.addf %138, %142 : vector<32x32xf32>
    %cst_48 = arith.constant 0.000000e+00 : f32
    %144 = vector.broadcast %cst_48 : f32 to vector<32x32xf32>
    %145 = arith.cmpf ogt, %143, %144 : vector<32x32xf32>
    %cst_49 = arith.constant 2.000000e-01 : f32
    %146 = vector.broadcast %cst_49 : f32 to vector<32x32xf32>
    %147 = arith.mulf %146, %143 : vector<32x32xf32>
    %148 = arith.select %145, %143, %147 : vector<32x32xi1>, vector<32x32xf32>
    %149 = vector.broadcast %140 : vector<32x1xf32> to vector<32x32xf32>
    %150 = arith.mulf %148, %149 : vector<32x32xf32>
    %151 = vector.broadcast %141 : vector<32x1xf32> to vector<32x32xf32>
    %152 = arith.addf %150, %151 : vector<32x32xf32>
    %153 = arith.truncf %152 : vector<32x32xf32> to vector<32x32xbf16>
    %c0_50 = arith.constant 0 : index
    %c0_51 = arith.constant 0 : index
    %154 = vector.load %arg8[%c0_50, %c0_51] : memref<8x4xf32, #tpu.memory_space<vmem>>, vector<8x1xf32>
    %c0_52 = arith.constant 0 : index
    %c1_53 = arith.constant 1 : index
    %155 = vector.load %arg8[%c0_52, %c1_53] : memref<8x4xf32, #tpu.memory_space<vmem>>, vector<8x1xf32>
    %c0_54 = arith.constant 0 : index
    %c2_55 = arith.constant 2 : index
    %156 = vector.load %arg8[%c0_54, %c2_55] : memref<8x4xf32, #tpu.memory_space<vmem>>, vector<8x1xf32>
    %c0_56 = arith.constant 0 : index
    %c0_57 = arith.constant 0 : index
    %157 = vector.load %arg3[%c0_56, %c0_57] : memref<8x96xbf16, #tpu.memory_space<vmem>>, vector<8x96xbf16>
    %158 = vector.extract_strided_slice %153 {offsets = [0, 31], sizes = [32, 1], strides = [1, 1]} : vector<32x32xbf16> to vector<32x1xbf16>
    %159 = vector.extract_strided_slice %153 {offsets = [0, 0], sizes = [32, 31], strides = [1, 1]} : vector<32x32xbf16> to vector<32x31xbf16>
    %160 = tpu.concatenate %158, %159 in 1 : vector<32x1xbf16>, vector<32x31xbf16> -> vector<32x32xbf16>
    %cst_58 = arith.constant 0.000000e+00 : bf16
    %161 = vector.broadcast %cst_58 : bf16 to vector<32x32xbf16>
    %162 = vector.shape_cast %34 : vector<1x32xi1> to vector<1x32xi1>
    %163 = vector.broadcast %162 : vector<1x32xi1> to vector<32x32xi1>
    %164 = arith.select %163, %160, %161 : vector<32x32xi1>, vector<32x32xbf16>
    %165 = vector.extract_strided_slice %153 {offsets = [0, 1], sizes = [32, 31], strides = [1, 1]} : vector<32x32xbf16> to vector<32x31xbf16>
    %166 = vector.extract_strided_slice %153 {offsets = [0, 0], sizes = [32, 1], strides = [1, 1]} : vector<32x32xbf16> to vector<32x1xbf16>
    %167 = tpu.concatenate %165, %166 in 1 : vector<32x31xbf16>, vector<32x1xbf16> -> vector<32x32xbf16>
    %cst_59 = arith.constant 0.000000e+00 : bf16
    %168 = vector.broadcast %cst_59 : bf16 to vector<32x32xbf16>
    %169 = vector.shape_cast %43 : vector<1x32xi1> to vector<1x32xi1>
    %170 = vector.broadcast %169 : vector<1x32xi1> to vector<32x32xi1>
    %171 = arith.select %170, %167, %168 : vector<32x32xi1>, vector<32x32xbf16>
    %172 = tpu.concatenate %164, %153, %171 in 0 : vector<32x32xbf16>, vector<32x32xbf16>, vector<32x32xbf16> -> vector<96x32xbf16>
    %cst_60 = arith.constant dense<0.000000e+00> : vector<8x32xf32>
    %173 = tpu.matmul %157, %172, %cst_60 {dimension_numbers = #tpu.dot_dimension_numbers<[1], [0], [0], [1], [0, 0, 1, 1], [], []>} : vector<8x96xbf16>, vector<96x32xbf16>, vector<8x32xf32> -> vector<8x32xf32>
    %174 = vector.broadcast %154 : vector<8x1xf32> to vector<8x32xf32>
    %175 = arith.addf %173, %174 : vector<8x32xf32>
    %cst_61 = arith.constant 0.000000e+00 : f32
    %176 = vector.broadcast %cst_61 : f32 to vector<8x32xf32>
    %177 = arith.maximumf %175, %176 : vector<8x32xf32>
    %178 = vector.broadcast %155 : vector<8x1xf32> to vector<8x32xf32>
    %179 = arith.mulf %177, %178 : vector<8x32xf32>
    %180 = vector.broadcast %156 : vector<8x1xf32> to vector<8x32xf32>
    %181 = arith.addf %179, %180 : vector<8x32xf32>
    %182 = arith.truncf %181 : vector<8x32xf32> to vector<8x32xbf16>
    %c0_62 = arith.constant 0 : index
    %c0_63 = arith.constant 0 : index
    %183 = vector.load %arg4[%c0_62, %c0_63] : memref<8x128xbf16, #tpu.memory_space<vmem>>, vector<8x128xbf16>
    %184 = vector.extract_strided_slice %153 {offsets = [0, 31], sizes = [32, 1], strides = [1, 1]} : vector<32x32xbf16> to vector<32x1xbf16>
    %185 = vector.extract_strided_slice %153 {offsets = [0, 0], sizes = [32, 31], strides = [1, 1]} : vector<32x32xbf16> to vector<32x31xbf16>
    %186 = tpu.concatenate %184, %185 in 1 : vector<32x1xbf16>, vector<32x31xbf16> -> vector<32x32xbf16>
    %cst_64 = arith.constant 0.000000e+00 : bf16
    %187 = vector.broadcast %cst_64 : bf16 to vector<32x32xbf16>
    %188 = vector.shape_cast %34 : vector<1x32xi1> to vector<1x32xi1>
    %189 = vector.broadcast %188 : vector<1x32xi1> to vector<32x32xi1>
    %190 = arith.select %189, %186, %187 : vector<32x32xi1>, vector<32x32xbf16>
    %191 = vector.extract_strided_slice %153 {offsets = [0, 1], sizes = [32, 31], strides = [1, 1]} : vector<32x32xbf16> to vector<32x31xbf16>
    %192 = vector.extract_strided_slice %153 {offsets = [0, 0], sizes = [32, 1], strides = [1, 1]} : vector<32x32xbf16> to vector<32x1xbf16>
    %193 = tpu.concatenate %191, %192 in 1 : vector<32x31xbf16>, vector<32x1xbf16> -> vector<32x32xbf16>
    %cst_65 = arith.constant 0.000000e+00 : bf16
    %194 = vector.broadcast %cst_65 : bf16 to vector<32x32xbf16>
    %195 = vector.shape_cast %43 : vector<1x32xi1> to vector<1x32xi1>
    %196 = vector.broadcast %195 : vector<1x32xi1> to vector<32x32xi1>
    %197 = arith.select %196, %193, %194 : vector<32x32xi1>, vector<32x32xbf16>
    %198 = vector.extract_strided_slice %153 {offsets = [0, 2], sizes = [32, 30], strides = [1, 1]} : vector<32x32xbf16> to vector<32x30xbf16>
    %199 = vector.extract_strided_slice %153 {offsets = [0, 0], sizes = [32, 2], strides = [1, 1]} : vector<32x32xbf16> to vector<32x2xbf16>
    %200 = tpu.concatenate %198, %199 in 1 : vector<32x30xbf16>, vector<32x2xbf16> -> vector<32x32xbf16>
    %cst_66 = arith.constant 0.000000e+00 : bf16
    %201 = vector.broadcast %cst_66 : bf16 to vector<32x32xbf16>
    %202 = vector.shape_cast %52 : vector<1x32xi1> to vector<1x32xi1>
    %203 = vector.broadcast %202 : vector<1x32xi1> to vector<32x32xi1>
    %204 = arith.select %203, %200, %201 : vector<32x32xi1>, vector<32x32xbf16>
    %205 = tpu.concatenate %190, %153, %197, %204 in 0 : vector<32x32xbf16>, vector<32x32xbf16>, vector<32x32xbf16>, vector<32x32xbf16> -> vector<128x32xbf16>
    %cst_67 = arith.constant dense<0.000000e+00> : vector<8x32xf32>
    %206 = tpu.matmul %183, %205, %cst_67 {dimension_numbers = #tpu.dot_dimension_numbers<[1], [0], [0], [1], [0, 0, 1, 1], [], []>} : vector<8x128xbf16>, vector<128x32xbf16>, vector<8x32xf32> -> vector<8x32xf32>
    %207 = vector.broadcast %154 : vector<8x1xf32> to vector<8x32xf32>
    %208 = arith.addf %206, %207 : vector<8x32xf32>
    %cst_68 = arith.constant 0.000000e+00 : f32
    %209 = vector.broadcast %cst_68 : f32 to vector<8x32xf32>
    %210 = arith.maximumf %208, %209 : vector<8x32xf32>
    %211 = vector.broadcast %155 : vector<8x1xf32> to vector<8x32xf32>
    %212 = arith.mulf %210, %211 : vector<8x32xf32>
    %213 = vector.broadcast %156 : vector<8x1xf32> to vector<8x32xf32>
    %214 = arith.addf %212, %213 : vector<8x32xf32>
    %215 = arith.truncf %214 : vector<8x32xf32> to vector<8x32xbf16>
    %c0_69 = arith.constant 0 : index
    %c3_70 = arith.constant 3 : index
    %216 = vector.load %arg8[%c0_69, %c3_70] : memref<8x4xf32, #tpu.memory_space<vmem>>, vector<8x1xf32>
    %217 = vector.extract_strided_slice %182 {offsets = [0, 31], sizes = [8, 1], strides = [1, 1]} : vector<8x32xbf16> to vector<8x1xbf16>
    %218 = vector.extract_strided_slice %182 {offsets = [0, 0], sizes = [8, 31], strides = [1, 1]} : vector<8x32xbf16> to vector<8x31xbf16>
    %219 = tpu.concatenate %217, %218 in 1 : vector<8x1xbf16>, vector<8x31xbf16> -> vector<8x32xbf16>
    %cst_71 = arith.constant 0.000000e+00 : bf16
    %220 = vector.broadcast %cst_71 : bf16 to vector<8x32xbf16>
    %221 = vector.shape_cast %34 : vector<1x32xi1> to vector<1x32xi1>
    %222 = vector.broadcast %221 : vector<1x32xi1> to vector<8x32xi1>
    %223 = arith.select %222, %219, %220 : vector<8x32xi1>, vector<8x32xbf16>
    %224 = vector.extract_strided_slice %182 {offsets = [0, 1], sizes = [8, 31], strides = [1, 1]} : vector<8x32xbf16> to vector<8x31xbf16>
    %225 = vector.extract_strided_slice %182 {offsets = [0, 0], sizes = [8, 1], strides = [1, 1]} : vector<8x32xbf16> to vector<8x1xbf16>
    %226 = tpu.concatenate %224, %225 in 1 : vector<8x31xbf16>, vector<8x1xbf16> -> vector<8x32xbf16>
    %cst_72 = arith.constant 0.000000e+00 : bf16
    %227 = vector.broadcast %cst_72 : bf16 to vector<8x32xbf16>
    %228 = vector.shape_cast %43 : vector<1x32xi1> to vector<1x32xi1>
    %229 = vector.broadcast %228 : vector<1x32xi1> to vector<8x32xi1>
    %230 = arith.select %229, %226, %227 : vector<8x32xi1>, vector<8x32xbf16>
    %231 = vector.extract_strided_slice %215 {offsets = [0, 30], sizes = [8, 2], strides = [1, 1]} : vector<8x32xbf16> to vector<8x2xbf16>
    %232 = vector.extract_strided_slice %215 {offsets = [0, 0], sizes = [8, 30], strides = [1, 1]} : vector<8x32xbf16> to vector<8x30xbf16>
    %233 = tpu.concatenate %231, %232 in 1 : vector<8x2xbf16>, vector<8x30xbf16> -> vector<8x32xbf16>
    %cst_73 = arith.constant 0.000000e+00 : bf16
    %234 = vector.broadcast %cst_73 : bf16 to vector<8x32xbf16>
    %235 = vector.shape_cast %25 : vector<1x32xi1> to vector<1x32xi1>
    %236 = vector.broadcast %235 : vector<1x32xi1> to vector<8x32xi1>
    %237 = arith.select %236, %233, %234 : vector<8x32xi1>, vector<8x32xbf16>
    %238 = vector.extract_strided_slice %215 {offsets = [0, 31], sizes = [8, 1], strides = [1, 1]} : vector<8x32xbf16> to vector<8x1xbf16>
    %239 = vector.extract_strided_slice %215 {offsets = [0, 0], sizes = [8, 31], strides = [1, 1]} : vector<8x32xbf16> to vector<8x31xbf16>
    %240 = tpu.concatenate %238, %239 in 1 : vector<8x1xbf16>, vector<8x31xbf16> -> vector<8x32xbf16>
    %cst_74 = arith.constant 0.000000e+00 : bf16
    %241 = vector.broadcast %cst_74 : bf16 to vector<8x32xbf16>
    %242 = vector.shape_cast %34 : vector<1x32xi1> to vector<1x32xi1>
    %243 = vector.broadcast %242 : vector<1x32xi1> to vector<8x32xi1>
    %244 = arith.select %243, %240, %241 : vector<8x32xi1>, vector<8x32xbf16>
    %245 = vector.extract_strided_slice %215 {offsets = [0, 1], sizes = [8, 31], strides = [1, 1]} : vector<8x32xbf16> to vector<8x31xbf16>
    %246 = vector.extract_strided_slice %215 {offsets = [0, 0], sizes = [8, 1], strides = [1, 1]} : vector<8x32xbf16> to vector<8x1xbf16>
    %247 = tpu.concatenate %245, %246 in 1 : vector<8x31xbf16>, vector<8x1xbf16> -> vector<8x32xbf16>
    %cst_75 = arith.constant 0.000000e+00 : bf16
    %248 = vector.broadcast %cst_75 : bf16 to vector<8x32xbf16>
    %249 = vector.shape_cast %43 : vector<1x32xi1> to vector<1x32xi1>
    %250 = vector.broadcast %249 : vector<1x32xi1> to vector<8x32xi1>
    %251 = arith.select %250, %247, %248 : vector<8x32xi1>, vector<8x32xbf16>
    %252 = vector.extract_strided_slice %182 {offsets = [0, 31], sizes = [8, 1], strides = [1, 1]} : vector<8x32xbf16> to vector<8x1xbf16>
    %253 = vector.extract_strided_slice %182 {offsets = [0, 0], sizes = [8, 31], strides = [1, 1]} : vector<8x32xbf16> to vector<8x31xbf16>
    %254 = tpu.concatenate %252, %253 in 1 : vector<8x1xbf16>, vector<8x31xbf16> -> vector<8x32xbf16>
    %cst_76 = arith.constant 0.000000e+00 : bf16
    %255 = vector.broadcast %cst_76 : bf16 to vector<8x32xbf16>
    %256 = vector.shape_cast %34 : vector<1x32xi1> to vector<1x32xi1>
    %257 = vector.broadcast %256 : vector<1x32xi1> to vector<8x32xi1>
    %258 = arith.select %257, %254, %255 : vector<8x32xi1>, vector<8x32xbf16>
    %259 = vector.extract_strided_slice %182 {offsets = [0, 1], sizes = [8, 31], strides = [1, 1]} : vector<8x32xbf16> to vector<8x31xbf16>
    %260 = vector.extract_strided_slice %182 {offsets = [0, 0], sizes = [8, 1], strides = [1, 1]} : vector<8x32xbf16> to vector<8x1xbf16>
    %261 = tpu.concatenate %259, %260 in 1 : vector<8x31xbf16>, vector<8x1xbf16> -> vector<8x32xbf16>
    %cst_77 = arith.constant 0.000000e+00 : bf16
    %262 = vector.broadcast %cst_77 : bf16 to vector<8x32xbf16>
    %263 = vector.shape_cast %43 : vector<1x32xi1> to vector<1x32xi1>
    %264 = vector.broadcast %263 : vector<1x32xi1> to vector<8x32xi1>
    %265 = arith.select %264, %261, %262 : vector<8x32xi1>, vector<8x32xbf16>
    %266 = vector.extract_strided_slice %182 {offsets = [0, 2], sizes = [8, 30], strides = [1, 1]} : vector<8x32xbf16> to vector<8x30xbf16>
    %267 = vector.extract_strided_slice %182 {offsets = [0, 0], sizes = [8, 2], strides = [1, 1]} : vector<8x32xbf16> to vector<8x2xbf16>
    %268 = tpu.concatenate %266, %267 in 1 : vector<8x30xbf16>, vector<8x2xbf16> -> vector<8x32xbf16>
    %cst_78 = arith.constant 0.000000e+00 : bf16
    %269 = vector.broadcast %cst_78 : bf16 to vector<8x32xbf16>
    %270 = vector.shape_cast %52 : vector<1x32xi1> to vector<1x32xi1>
    %271 = vector.broadcast %270 : vector<1x32xi1> to vector<8x32xi1>
    %272 = arith.select %271, %268, %269 : vector<8x32xi1>, vector<8x32xbf16>
    %273 = vector.extract_strided_slice %215 {offsets = [0, 31], sizes = [8, 1], strides = [1, 1]} : vector<8x32xbf16> to vector<8x1xbf16>
    %274 = vector.extract_strided_slice %215 {offsets = [0, 0], sizes = [8, 31], strides = [1, 1]} : vector<8x32xbf16> to vector<8x31xbf16>
    %275 = tpu.concatenate %273, %274 in 1 : vector<8x1xbf16>, vector<8x31xbf16> -> vector<8x32xbf16>
    %cst_79 = arith.constant 0.000000e+00 : bf16
    %276 = vector.broadcast %cst_79 : bf16 to vector<8x32xbf16>
    %277 = vector.shape_cast %34 : vector<1x32xi1> to vector<1x32xi1>
    %278 = vector.broadcast %277 : vector<1x32xi1> to vector<8x32xi1>
    %279 = arith.select %278, %275, %276 : vector<8x32xi1>, vector<8x32xbf16>
    %280 = vector.extract_strided_slice %215 {offsets = [0, 1], sizes = [8, 31], strides = [1, 1]} : vector<8x32xbf16> to vector<8x31xbf16>
    %281 = vector.extract_strided_slice %215 {offsets = [0, 0], sizes = [8, 1], strides = [1, 1]} : vector<8x32xbf16> to vector<8x1xbf16>
    %282 = tpu.concatenate %280, %281 in 1 : vector<8x31xbf16>, vector<8x1xbf16> -> vector<8x32xbf16>
    %cst_80 = arith.constant 0.000000e+00 : bf16
    %283 = vector.broadcast %cst_80 : bf16 to vector<8x32xbf16>
    %284 = vector.shape_cast %43 : vector<1x32xi1> to vector<1x32xi1>
    %285 = vector.broadcast %284 : vector<1x32xi1> to vector<8x32xi1>
    %286 = arith.select %285, %282, %283 : vector<8x32xi1>, vector<8x32xbf16>
    %c0_81 = arith.constant 0 : index
    %c0_82 = arith.constant 0 : index
    %287 = vector.load %arg5[%c0_81, %c0_82] : memref<8x56xbf16, #tpu.memory_space<vmem>>, vector<8x56xbf16>
    %288 = tpu.concatenate %223, %182, %230, %237, %244, %215, %251 in 0 : vector<8x32xbf16>, vector<8x32xbf16>, vector<8x32xbf16>, vector<8x32xbf16>, vector<8x32xbf16>, vector<8x32xbf16>, vector<8x32xbf16> -> vector<56x32xbf16>
    %cst_83 = arith.constant dense<0.000000e+00> : vector<8x32xf32>
    %289 = tpu.matmul %287, %288, %cst_83 {dimension_numbers = #tpu.dot_dimension_numbers<[1], [0], [0], [1], [0, 0, 1, 1], [], []>} : vector<8x56xbf16>, vector<56x32xbf16>, vector<8x32xf32> -> vector<8x32xf32>
    %290 = vector.broadcast %216 : vector<8x1xf32> to vector<8x32xf32>
    %291 = arith.addf %289, %290 : vector<8x32xf32>
    %c0_84 = arith.constant 0 : index
    %c0_85 = arith.constant 0 : index
    %292 = vector.load %arg9[%c0_84, %c0_85] : memref<8x32xf32, #tpu.memory_space<vmem>>, vector<8x32xf32>
    tpu.vector_store %arg9[%c0_84, %c0_85], %291 {strides = array<i32>} : memref<8x32xf32, #tpu.memory_space<vmem>>, vector<8x32xf32>,
    %c0_86 = arith.constant 0 : index
    %c0_87 = arith.constant 0 : index
    %293 = vector.load %arg6[%c0_86, %c0_87] : memref<8x56xbf16, #tpu.memory_space<vmem>>, vector<8x56xbf16>
    %294 = tpu.concatenate %258, %182, %265, %272, %279, %215, %286 in 0 : vector<8x32xbf16>, vector<8x32xbf16>, vector<8x32xbf16>, vector<8x32xbf16>, vector<8x32xbf16>, vector<8x32xbf16>, vector<8x32xbf16> -> vector<56x32xbf16>
    %cst_88 = arith.constant dense<0.000000e+00> : vector<8x32xf32>
    %295 = tpu.matmul %293, %294, %cst_88 {dimension_numbers = #tpu.dot_dimension_numbers<[1], [0], [0], [1], [0, 0, 1, 1], [], []>} : vector<8x56xbf16>, vector<56x32xbf16>, vector<8x32xf32> -> vector<8x32xf32>
    %296 = vector.broadcast %216 : vector<8x1xf32> to vector<8x32xf32>
    %297 = arith.addf %295, %296 : vector<8x32xf32>
    %c0_89 = arith.constant 0 : index
    %c0_90 = arith.constant 0 : index
    %298 = vector.load %arg10[%c0_89, %c0_90] : memref<8x32xf32, #tpu.memory_space<vmem>>, vector<8x32xf32>
    tpu.vector_store %arg10[%c0_89, %c0_90], %297 {strides = array<i32>} : memref<8x32xf32, #tpu.memory_space<vmem>>, vector<8x32xf32>,
    return
  }
  func.func @transform_0(%arg0: i32) -> (i32, i32) {
    %c0_i32 = arith.constant 0 : i32
    %c0_i32_0 = arith.constant 0 : i32
    return %c0_i32, %arg0 : i32, i32
  }
  func.func @transform_1(%arg0: i32) -> (i32, i32, i32) {
    %c0_i32 = arith.constant 0 : i32
    %c0_i32_0 = arith.constant 0 : i32
    %c0_i32_1 = arith.constant 0 : i32
    %c0_i32_2 = arith.constant 0 : i32
    return %c0_i32, %c0_i32_0, %c0_i32_1 : i32, i32, i32
  }
  func.func @transform_2(%arg0: i32) -> (i32, i32) {
    %c0_i32 = arith.constant 0 : i32
    %c0_i32_0 = arith.constant 0 : i32
    %c0_i32_1 = arith.constant 0 : i32
    return %c0_i32, %c0_i32_0 : i32, i32
  }
  func.func @transform_3(%arg0: i32) -> (i32, i32) {
    %c0_i32 = arith.constant 0 : i32
    %c0_i32_0 = arith.constant 0 : i32
    %c0_i32_1 = arith.constant 0 : i32
    return %c0_i32, %c0_i32_0 : i32, i32
  }
  func.func @transform_4(%arg0: i32) -> (i32, i32) {
    %c0_i32 = arith.constant 0 : i32
    %c0_i32_0 = arith.constant 0 : i32
    %c0_i32_1 = arith.constant 0 : i32
    return %c0_i32, %c0_i32_0 : i32, i32
  }
  func.func @transform_5(%arg0: i32) -> (i32, i32) {
    %c0_i32 = arith.constant 0 : i32
    %c0_i32_0 = arith.constant 0 : i32
    %c0_i32_1 = arith.constant 0 : i32
    return %c0_i32, %c0_i32_0 : i32, i32
  }
  func.func @transform_6(%arg0: i32) -> (i32, i32) {
    %c0_i32 = arith.constant 0 : i32
    %c0_i32_0 = arith.constant 0 : i32
    %c0_i32_1 = arith.constant 0 : i32
    return %c0_i32, %c0_i32_0 : i32, i32
  }
  func.func @transform_7(%arg0: i32) -> (i32, i32) {
    %c0_i32 = arith.constant 0 : i32
    %c0_i32_0 = arith.constant 0 : i32
    %c0_i32_1 = arith.constant 0 : i32
    return %c0_i32, %c0_i32_0 : i32, i32
  }
  func.func @transform_8(%arg0: i32) -> (i32, i32) {
    %c0_i32 = arith.constant 0 : i32
    %c0_i32_0 = arith.constant 0 : i32
    return %c0_i32, %arg0 : i32, i32
  }
  func.func @transform_9(%arg0: i32) -> (i32, i32) {
    %c0_i32 = arith.constant 0 : i32
    %c0_i32_0 = arith.constant 0 : i32
    return %c0_i32, %arg0 : i32, i32
  }
}

</mosaic_0001>

<bundles_post_ra>
// kernel: decoder_forward.1
= control target key start
LH: loop header
LB: loop body
LE: loop exit
PB: predicated region body
PF: predicated region fallthrough
CT: control target
= control target key end

     0   :  { %v1241_v3 = vmov 0   ;;  %s1242_s17 = smov 127   ;;  %s1243_s18 = smov 31   ;;  %vm166_vm0 = vcmask 785408   ;;  %v1246_v12 = vmov 1   ;;  %v1247_v13 = vmov 2   ;;  %s1693_s0 = inlined_call_operand.vmem [shape: f32[32,32], index: 0, kind: input, shape index: {}]   ;;  %s1694_s1 = inlined_call_operand.vmem [shape: bf16[3,32,96], index: 1, kind: input, shape index: {}]   ;;  %s1695_s6 = inlined_call_operand.vmem [shape: f32[32,9], index: 6, kind: input, shape index: {}]   ;;  %s1696_s7 = inlined_call_operand.vmem [shape: f32[8,4], index: 7, kind: input, shape index: {}]   ;;  %s1697_s2 = inlined_call_operand.vmem [shape: bf16[8,96], index: 2, kind: input, shape index: {}]   ;;  %s1698_s3 = inlined_call_operand.vmem [shape: bf16[8,128], index: 3, kind: input, shape index: {}]   ;;  %s1699_s4 = inlined_call_operand.vmem [shape: bf16[8,56], index: 4, kind: input, shape index: {}]   ;;  %s1700_s5 = inlined_call_operand.vmem [shape: bf16[8,56], index: 5, kind: input, shape index: {}]   ;;  %s1701_s8 = inlined_call_operand.vmem [shape: f32[8,32], index: 8, kind: output, shape index: {0}]   ;;  %s1702_s9 = inlined_call_operand.vmem [shape: f32[8,32], index: 9, kind: output, shape index: {1}]  }
   0x1   :  { %v66_v0 = vld [vmem:[%s1693_s0 + $0x10] sm:$0xff]  ;;  %v67_v1 = vld [vmem:[%s1693_s0 + $0x18] sm:$0xff]  ;;  %v64_v2 = vld [vmem:[%s1693_s0] sm:$0xff]  ;;  %1207 = vset.pattern.permute.xlu1 %v1241_v3  ;;  %1206 = vset.pattern.permute.xlu0 %v1241_v3  ;;  %s1244_s19 = smov 97   ;;  %v34_v14 = vlaneseq  ;;  %vm112_vm3 = vcmask 252928   ;;  %vm84_vm7 = vcmask 7168  }
   0x2   :  { %v1321_v4 = vpack.c.bf16 %v67_v1, %v66_v0  ;;  %v65_v5 = vld [vmem:[%s1693_s0 + $0x8] sm:$0xff]  ;;  %s1245_s0 = smov 1   ;;  %v1235_v7 = vld [vmem:[%s1694_s1] sm:$0xff]   ;;  %v1351_v8 = vld [vmem:[%s1695_s6 + $0x18] sm:$0xff]  ;;  %s1256_s21 = smov 126  }
   0x3   :  { %v1326_v6 = vpack.c.bf16 %v65_v5, %v64_v2  ;;  %1079 = vmatprep.mubr.msk.bf16.mxu0 %vm166_vm0, %v1235_v7  ;;  %v1356_v9 = vld [vmem:[%s1695_s6] sm:$0xff]  ;;  %v1361_v10 = vld [vmem:[%s1695_s6 + $0x10] sm:$0xff]  ;;  %v1368_v11 = vld [vmem:[%s1695_s6 + $0x8] sm:$0xff]  ;;  %v35_v15 = vand.u32 127, %v34_v14  ;;  %v98_v18 = vshrl.u32 %v34_v14, 7 }
   0x4   :  { %106 = vrot.lane.b32.xlu0 %v1321_v4, %s1242_s17  ;;  %v1236_v45 = vld [vmem:[%s1694_s1 + $0x8] sm:$0xff]   ;;  %v865_v19 = vld [vmem:[%s1699_s4] sm:$0xf] }
   0x5   :  { %104 = vrot.lane.b32.xlu1 %v1326_v6, %s1242_s17  ;;  %v1386_v16 = vand.u32 15, %v35_v15  ;;  %v1393_v20 = vsub.s32 0, %v98_v18 }
   0x7   :  { %v56_v17 = vadd.s32 1, %v1386_v16  ;;  %v52_v24 = vadd.s32 4294967295, %v1386_v16 }
   0x8   :  { %110 = vrot.lane.b32.xlu0 %v1321_v4, %s1243_s18 }
   0x9   :  { %108 = vrot.lane.b32.xlu1 %v1326_v6, %s1243_s18  ;;  %vm58_vm1 = vcmp.lt.s32.totalorder %v56_v17, 16  ;;  %vm53_vm5 = vcmp.ge.s32.totalorder %v52_v24, 0 }
   0xa   :  { %vm1389_vm2 = vmpackc.low %vm58_vm1, %vm58_vm1 }
   0xb   :  { %v124_v21 = vsel %vm1389_vm2, 65537, %v1241_v3  ;;  %vm1410_vm6 = vmpackc.low %vm53_vm5, %vm53_vm5 }
   0xc   :  { %78 = vrot.lane.b32.xlu0 %v1321_v4, %s1244_s19  ;;  %v128_v22 = vrot.slane %v124_v21, %v1393_v20  ;;  %v96_v34 = vsel %vm1410_vm6, 65537, %v1241_v3 }
   0xd   :  { %82 = vrot.lane.b32.xlu1 %v1321_v4, %s1245_s0  ;;  %v100_v37 = vrot.slane %v96_v34, %v1393_v20  ;;  %v1249_v34 = vmov 4  }
   0xe   :  { %vm1400_vm4 = vcmp.ne.s16.totalorder %v128_v22, 0 }
   0xf   :  { %vm1426_vm8 = vcmp.ne.s16.totalorder %v100_v37, 0 }
  0x10   :  { %76 = vrot.lane.b32.xlu0 %v1326_v6, %s1244_s19 }
  0x11   :  { %80 = vrot.lane.b32.xlu1 %v1326_v6, %s1245_s0 }
  0x14   :  { %148 = vperm.xlu0 %1206, %v1361_v10  }
  0x15   :  { %153 = vperm.xlu1 %1207, %v1351_v8  }
  0x18   :  { %143 = vperm.xlu0 %1206, %v1368_v11  }
  0x19   :  { %138 = vperm.xlu1 %1207, %v1356_v9  }
  0x1c   :  { %1209 = vset.pattern.permute.xlu0 %v1246_v12 }
  0x1d   :  { %1208 = vset.pattern.permute.xlu1 %v1246_v12  ;;  %247 = vperm.xlu0 %1209, %v1351_v8  }
  0x1e   :  { %243 = vperm.xlu1 %1208, %v1361_v10  }
  0x21   :  { %235 = vperm.xlu0 %1209, %v1356_v9  }
  0x22   :  { %1210 = vset.pattern.permute.xlu1 %v1247_v13 }
  0x23   :  { %263 = vperm.xlu1 %1210, %v1361_v10  }
  0x25   :  { %1212 = vset.pattern.permute.xlu0 %v1247_v13 }
  0x26   :  { %255 = vperm.xlu0 %1212, %v1356_v9  }
  0x27   :  { %267 = vperm.xlu1 %1210, %v1351_v8  }
  0x2b   :  { %1211 = vset.pattern.permute.xlu1 %v1246_v12 }
  0x2c   :  { %239 = vperm.xlu1 %1211, %v1368_v11  }
  0x30   :  { %1213 = vset.pattern.permute.xlu1 %v1247_v13 }
  0x31   :  { %259 = vperm.xlu1 %1213, %v1368_v11  }
  0x76   :  { %v107_v23 = vpop.permute.xlu0 %106 }
  0x77   :  { %v105_v25 = vpop.permute.xlu1 %104 }
  0x7a   :  { %v111_v27 = vpop.permute.xlu0 %110 }
  0x7b   :  { %v109_v28 = vpop.permute.xlu1 %108  ;;  %v119_v29 = vsel %vm112_vm3, %v107_v23, %v111_v27 }
  0x7c   :  { %1175 = vmatprep.subr.msk.bf16.mxu0 %vm1400_vm4, %v119_v29  ;;  %v131_v30 = vsel %vm1400_vm4, %v119_v29, 0  ;;  %v115_v31 = vsel %vm112_vm3, %v105_v25, %v109_v28 }
  0x7d   :  { %1068 = vmatpush3.bf16.msra.mxu0 %v131_v30  ;;  %v130_v33 = vsel %vm1400_vm4, %v115_v31, 0 }
  0x7e   :  { %1176 = vmatprep.subr.msk.bf16.mxu0 %vm1400_vm4, %v115_v31  ;;  %v79_v35 = vpop.permute.xlu0 %78  ;;  %v1237_v31 = vld [vmem:[%s1694_s1 + $0x10] sm:$0xff]  }
  0x7f   :  { %v83_v36 = vpop.permute.xlu1 %82  ;;  %1095 = vmatprep.mubr.msk.bf16.mxu1 %vm166_vm0, %v1237_v31 }
  0x80   :  { %v91_v38 = vsel %vm84_vm7, %v79_v35, %v83_v36  ;;  %v1250_v35 = vmov 5  }
  0x81   :  { %1070 = vmatpush3.bf16.msra.mxu0 %v130_v33  ;;  %v103_v42 = vsel %vm1426_vm8, %v91_v38, 0  ;;  %v1248_v33 = vmov 3  }
  0x82   :  { %1071 = vmatprep.subr.bf16.mxu0 %v1321_v4  ;;  %v77_v40 = vpop.permute.xlu0 %76  ;;  %1214 = vset.pattern.permute.xlu1 %v1248_v33 }
  0x83   :  { %v81_v41 = vpop.permute.xlu1 %80  ;;  %1215 = vset.pattern.permute.xlu0 %v1248_v33 }
  0x84   :  { %v87_v43 = vsel %vm84_vm7, %v77_v40, %v81_v41 }
  0x85   :  { %1072 = vmatpush3.bf16.msra.mxu0 %v1321_v4  ;;  %v102_v44 = vsel %vm1426_vm8, %v87_v43, 0 }
  0x86   :  { %1073 = vmatprep.subr.bf16.mxu0 %v1326_v6 }
  0x89   :  { %1074 = vmatpush3.bf16.msra.mxu0 %v1326_v6 }
  0x8a   :  { %1177 = vmatprep.subr.msk.bf16.mxu0 %vm1426_vm8, %v91_v38 }
  0x8d   :  { %1076 = vmatpush3.bf16.msra.mxu0 %v103_v42 }
  0x8e   :  { %1178 = vmatprep.subr.msk.bf16.mxu0 %vm1426_vm8, %v87_v43 }
  0x8f   :  { %v149_v48 = vpop.permute.xlu0 %148 }
  0x90   :  { %v154_v46 = vpop.permute.xlu1 %153 }
  0x91   :  { %1078 = vmatpush3.bf16.msra.mxu0 %v102_v44 }
  0x93   :  { %v144_v50 = vpop.permute.xlu0 %143 }
  0x94   :  { %1080 = vmatmul.mubr.msk.bf16.vlgmr.msra.gmra.mxu0 %vm166_vm0, %v1236_v45  ;;  %v139_v47 = vpop.permute.xlu1 %138 }
  0x98   :  { %v248_v54 = vpop.permute.xlu0 %247 }
  0x99   :  { %v244_v49 = vpop.permute.xlu1 %243 }
  0x9c   :  { %v236_v2 = vpop.permute.xlu0 %235 }
  0x9e   :  { %v264_v51 = vpop.permute.xlu1 %263 }
  0xa1   :  { %v256_v25 = vpop.permute.xlu0 %255 }
  0xa2   :  { %v268_v55 = vpop.permute.xlu1 %267 }
  0xa7   :  { %v240_v63 = vpop.permute.xlu1 %239 }
  0xac   :  { %v260_v18 = vpop.permute.xlu1 %259 }
 0x154   :  { %v1081_v52 = vpop.f32.mrf.mxu0 }
 0x155   :  { %v216_v53 = vadd.f32 %v1081_v52, %v149_v48 }
 0x156   :  { %v207_v56 = vpop.f32.mrf.mxu0 }
 0x157   :  { %vm224_vm9 = vcmp.gt.f32.partialorder %v216_v53, 0.0  ;;  %v228_v57 = vmul.f32 0.2, %v216_v53  ;;  %v208_v58 = vadd.f32 %v207_v56, %v139_v47 }
 0x158   :  { %v1082_v59 = vpop.f32.mrf.mxu0 }
 0x159   :  { %v232_v60 = vsel %vm224_vm9, %v216_v53, %v228_v57  ;;  %v226_v61 = vmul.f32 0.2, %v208_v58  ;;  %v219_v62 = vadd.f32 %v1082_v59, %v154_v46  ;;  %vm222_vm10 = vcmp.gt.f32.partialorder %v208_v58, 0.0  ;;  %v1238_v53 = vld [vmem:[%s1694_s1 + $0x18] sm:$0xff]  }
 0x15a   :  { %v210_v0 = vpop.f32.mrf.mxu0  ;;  %v252_v5 = vmul.f32 %v244_v49, %v232_v60 }
 0x15b   :  { %vm225_vm11 = vcmp.gt.f32.partialorder %v219_v62, 0.0  ;;  %v229_v1 = vmul.f32 0.2, %v219_v62  ;;  %v211_v4 = vadd.f32 %v210_v0, %v144_v50  ;;  %v230_v7 = vsel %vm222_vm10, %v208_v58, %v226_v61 }
 0x15c   :  { %v272_v21 = vadd.f32 %v264_v51, %v252_v5  ;;  %v250_v23 = vmul.f32 %v236_v2, %v230_v7 }
 0x15d   :  { %v233_v6 = vsel %vm225_vm11, %v219_v62, %v229_v1  ;;  %v227_v14 = vmul.f32 0.2, %v211_v4  ;;  %vm223_vm12 = vcmp.gt.f32.partialorder %v211_v4, 0.0 }
 0x15e   :  { %v253_v15 = vmul.f32 %v248_v54, %v233_v6  ;;  %v270_v29 = vadd.f32 %v256_v25, %v250_v23 }
 0x15f   :  { %v231_v17 = vsel %vm223_vm12, %v211_v4, %v227_v14  ;;  %vm1257_vm12 = vmmov 0  }
 0x160   :  { %v273_v22 = vadd.f32 %v268_v55, %v253_v15  ;;  %v251_v24 = vmul.f32 %v240_v63, %v231_v17 }
 0x162   :  { %v275_v27 = vpack.c.bf16 %v273_v22, %v272_v21  ;;  %v271_v28 = vadd.f32 %v260_v18, %v251_v24 }
 0x164   :  { %307 = vrot.lane.b32.xlu0 %v275_v27, %s1243_s18  ;;  %303 = vrot.lane.b32.xlu1 %v275_v27, %s1242_s17  ;;  %v274_v30 = vpack.c.bf16 %v271_v28, %v270_v29 }
 0x168   :  { %305 = vrot.lane.b32.xlu0 %v274_v30, %s1243_s18  ;;  %301 = vrot.lane.b32.xlu1 %v274_v30, %s1242_s17 }
 0x16c   :  { %289 = vrot.lane.b32.xlu0 %v275_v27, %s1245_s0  ;;  %285 = vrot.lane.b32.xlu1 %v275_v27, %s1244_s19 }
 0x170   :  { %287 = vrot.lane.b32.xlu0 %v274_v30, %s1245_s0  ;;  %283 = vrot.lane.b32.xlu1 %v274_v30, %s1244_s19 }
 0x174   :  { %328 = vperm.xlu1 %1214, %v1361_v10   ;;  %332 = vperm.xlu0 %1215, %v1351_v8  }
 0x178   :  { %320 = vperm.xlu1 %1214, %v1356_v9   ;;  %1216 = vset.pattern.permute.xlu0 %v1249_v34 }
 0x179   :  { %421 = vperm.xlu0 %1216, %v1361_v10  }
 0x17c   :  { %324 = vperm.xlu1 %1214, %v1368_v11  }
 0x17d   :  { %1219 = vset.pattern.permute.xlu0 %v1250_v35 }
 0x17e   :  { %445 = vperm.xlu0 %1219, %v1351_v8  }
 0x180   :  { %1217 = vset.pattern.permute.xlu1 %v1249_v34 }
 0x181   :  { %425 = vperm.xlu1 %1217, %v1351_v8  }
 0x182   :  { %433 = vperm.xlu0 %1219, %v1356_v9  }
 0x185   :  { %1218 = vset.pattern.permute.xlu1 %v1250_v35 }
 0x186   :  { %441 = vperm.xlu1 %1218, %v1361_v10  }
 0x18a   :  { %1220 = vset.pattern.permute.xlu1 %v1249_v34 }
 0x18b   :  { %413 = vperm.xlu1 %1220, %v1356_v9  }
 0x18f   :  { %417 = vperm.xlu1 %1220, %v1368_v11  }
 0x193   :  { %1221 = vset.pattern.permute.xlu1 %v1250_v35 }
 0x194   :  { %437 = vperm.xlu1 %1221, %v1368_v11  }
 0x1d6   :  { %v308_v36 = vpop.permute.xlu0 %307  ;;  %v304_v37 = vpop.permute.xlu1 %303 }
 0x1d7   :  { %v315_v38 = vsel %vm112_vm3, %v304_v37, %v308_v36 }
 0x1d8   :  { %1179 = vmatprep.subr.msk.bf16.mxu1 %vm1400_vm4, %v315_v38  ;;  %v318_v40 = vsel %vm1400_vm4, %v315_v38, 0 }
 0x1d9   :  { %1084 = vmatpush3.bf16.msra.mxu1 %v318_v40 }
 0x1da   :  { %v306_v41 = vpop.permute.xlu0 %305  ;;  %v302_v42 = vpop.permute.xlu1 %301 }
 0x1db   :  { %v311_v43 = vsel %vm112_vm3, %v302_v42, %v306_v41  ;;  %v1239_v42 = vld [vmem:[%s1694_s1 + $0x20] sm:$0xff]  }
 0x1dc   :  { %1180 = vmatprep.subr.msk.bf16.mxu1 %vm1400_vm4, %v311_v43  ;;  %v317_v44 = vsel %vm1400_vm4, %v311_v43, 0  ;;  %1111 = vmatprep.mubr.msk.bf16.mxu0 %vm166_vm0, %v1239_v42  ;;  %v1251_v43 = vmov 6  }
 0x1dd   :  { %1086 = vmatpush3.bf16.msra.mxu1 %v317_v44  ;;  %1223 = vset.pattern.permute.xlu1 %v1251_v43  ;;  %v1252_v44 = vmov 7  }
 0x1de   :  { %1087 = vmatprep.subr.bf16.mxu1 %v275_v27  ;;  %v290_v45 = vpop.permute.xlu0 %289  ;;  %v286_v46 = vpop.permute.xlu1 %285  ;;  %1222 = vset.pattern.permute.xlu0 %v1251_v43 }
 0x1df   :  { %v297_v47 = vsel %vm84_vm7, %v286_v46, %v290_v45  ;;  %v1253_v45 = vmov 8  }
 0x1e0   :  { %v300_v50 = vsel %vm1426_vm8, %v297_v47, 0 }
 0x1e1   :  { %1088 = vmatpush3.bf16.msra.mxu1 %v275_v27 }
 0x1e2   :  { %1089 = vmatprep.subr.bf16.mxu1 %v274_v30  ;;  %v288_v48 = vpop.permute.xlu0 %287  ;;  %v284_v49 = vpop.permute.xlu1 %283 }
 0x1e3   :  { %v293_v51 = vsel %vm84_vm7, %v284_v49, %v288_v48 }
 0x1e4   :  { %v299_v52 = vsel %vm1426_vm8, %v293_v51, 0 }
 0x1e5   :  { %1090 = vmatpush3.bf16.msra.mxu1 %v274_v30 }
 0x1e6   :  { %1181 = vmatprep.subr.msk.bf16.mxu1 %vm1426_vm8, %v297_v47 }
 0x1e9   :  { %1092 = vmatpush3.bf16.msra.mxu1 %v300_v50 }
 0x1ea   :  { %1182 = vmatprep.subr.msk.bf16.mxu1 %vm1426_vm8, %v293_v51 }
 0x1ed   :  { %1094 = vmatpush3.bf16.msra.mxu1 %v299_v52 }
 0x1ef   :  { %v329_v54 = vpop.permute.xlu1 %328  ;;  %v333_v58 = vpop.permute.xlu0 %332 }
 0x1f0   :  { %1096 = vmatmul.mubr.msk.bf16.vlgmr.msra.gmra.mxu1 %vm166_vm0, %v1238_v53 }
 0x1f3   :  { %v321_v55 = vpop.permute.xlu1 %320 }
 0x1f4   :  { %v422_v62 = vpop.permute.xlu0 %421 }
 0x1f7   :  { %v325_v56 = vpop.permute.xlu1 %324 }
 0x1f9   :  { %v446_v17 = vpop.permute.xlu0 %445 }
 0x1fc   :  { %v426_v57 = vpop.permute.xlu1 %425 }
 0x1fd   :  { %v434_v36 = vpop.permute.xlu0 %433 }
 0x201   :  { %v442_v59 = vpop.permute.xlu1 %441 }
 0x206   :  { %v414_v63 = vpop.permute.xlu1 %413 }
 0x20a   :  { %v418_v21 = vpop.permute.xlu1 %417 }
 0x20f   :  { %v438_v29 = vpop.permute.xlu1 %437 }
 0x2b0   :  { %v1097_v60 = vpop.f32.mrf.mxu1 }
 0x2b1   :  { %v394_v61 = vadd.f32 %v1097_v60, %v329_v54 }
 0x2b2   :  { %v385_v0 = vpop.f32.mrf.mxu1 }
 0x2b3   :  { %v406_v1 = vmul.f32 0.2, %v394_v61  ;;  %vm402_vm13 = vcmp.gt.f32.partialorder %v394_v61, 0.0  ;;  %v386_v2 = vadd.f32 %v385_v0, %v321_v55 }
 0x2b4   :  { %v1098_v4 = vpop.f32.mrf.mxu1 }
 0x2b5   :  { %v410_v5 = vsel %vm402_vm13, %v394_v61, %v406_v1  ;;  %v404_v6 = vmul.f32 0.2, %v386_v2  ;;  %v397_v7 = vadd.f32 %v1098_v4, %v333_v58  ;;  %vm400_vm14 = vcmp.gt.f32.partialorder %v386_v2, 0.0 }
 0x2b6   :  { %v388_v14 = vpop.f32.mrf.mxu1  ;;  %v430_v22 = vmul.f32 %v422_v62, %v410_v5 }
 0x2b7   :  { %vm403_vm15 = vcmp.gt.f32.partialorder %v397_v7, 0.0  ;;  %v407_v15 = vmul.f32 0.2, %v397_v7  ;;  %v389_v18 = vadd.f32 %v388_v14, %v325_v56  ;;  %v408_v23 = vsel %vm400_vm14, %v386_v2, %v404_v6 }
 0x2b8   :  { %v450_v30 = vadd.f32 %v442_v59, %v430_v22  ;;  %v428_v31 = vmul.f32 %v414_v63, %v408_v23  ;;  %v1254_v22 = vmov 0.0  }
 0x2b9   :  { %v411_v24 = vsel %vm403_vm15, %v397_v7, %v407_v15  ;;  %v405_v25 = vmul.f32 0.2, %v389_v18  ;;  %vm401_vm1 = vcmp.gt.f32.partialorder %v389_v18, 0.0  ;;  %1115 = vmatprep.subr.bf16.mxu1 %v1254_v22  ;;  %1127 = vmatprep.mubr.msk.bf16.mxu1 %vm1257_vm12, %v1254_v22  ;;  %vm741_vm15 = vcmask 244736  }
 0x2ba   :  { %v431_v27 = vmul.f32 %v426_v57, %v411_v24  ;;  %v448_v40 = vadd.f32 %v434_v36, %v428_v31  ;;  %v1240_v57 = vld [vmem:[%s1694_s1 + $0x28] sm:$0xff]   ;;  %s1255_s1 = smov 30  }
 0x2bb   :  { %v409_v28 = vsel %vm401_vm1, %v389_v18, %v405_v25 }
 0x2bc   :  { %v451_v34 = vadd.f32 %v446_v17, %v431_v27  ;;  %v429_v35 = vmul.f32 %v418_v21, %v409_v28 }
 0x2be   :  { %v453_v37 = vpack.c.bf16 %v451_v34, %v450_v30  ;;  %v449_v38 = vadd.f32 %v438_v29, %v429_v35 }
 0x2c0   :  { %485 = vrot.lane.b32.xlu1 %v453_v37, %s1243_s18  ;;  %481 = vrot.lane.b32.xlu0 %v453_v37, %s1242_s17  ;;  %v452_v41 = vpack.c.bf16 %v449_v38, %v448_v40 }
 0x2c4   :  { %483 = vrot.lane.b32.xlu1 %v452_v41, %s1243_s18  ;;  %479 = vrot.lane.b32.xlu0 %v452_v41, %s1242_s17 }
 0x2c8   :  { %467 = vrot.lane.b32.xlu1 %v453_v37, %s1245_s0  ;;  %463 = vrot.lane.b32.xlu0 %v453_v37, %s1244_s19 }
 0x2cc   :  { %465 = vrot.lane.b32.xlu1 %v452_v41, %s1245_s0  ;;  %461 = vrot.lane.b32.xlu0 %v452_v41, %s1244_s19 }
 0x2d0   :  { %510 = vperm.xlu1 %1223, %v1351_v8   ;;  %506 = vperm.xlu0 %1222, %v1361_v10  }
 0x2d4   :  { %498 = vperm.xlu1 %1223, %v1356_v9   ;;  %502 = vperm.xlu0 %1222, %v1368_v11  }
 0x2d8   :  { %1224 = vset.pattern.permute.xlu1 %v1252_v44  ;;  %1225 = vset.pattern.permute.xlu0 %v1252_v44 }
 0x2d9   :  { %599 = vperm.xlu1 %1224, %v1361_v10   ;;  %603 = vperm.xlu0 %1225, %v1351_v8  }
 0x2dd   :  { %1226 = vset.pattern.permute.xlu1 %v1253_v45  ;;  %591 = vperm.xlu0 %1225, %v1356_v9  }
 0x2de   :  { %619 = vperm.xlu1 %1226, %v1361_v10  }
 0x2e1   :  { %1228 = vset.pattern.permute.xlu0 %v1253_v45 }
 0x2e2   :  { %623 = vperm.xlu1 %1226, %v1351_v8   ;;  %611 = vperm.xlu0 %1228, %v1356_v9  }
 0x2e6   :  { %1227 = vset.pattern.permute.xlu1 %v1252_v44  ;;  %1231 = vset.pattern.permute.xlu0 %v1246_v12 }
 0x2e7   :  { %595 = vperm.xlu1 %1227, %v1368_v11  }
 0x2eb   :  { %1229 = vset.pattern.permute.xlu1 %v1253_v45 }
 0x2ec   :  { %615 = vperm.xlu1 %1229, %v1368_v11  }
 0x2f0   :  { %1230 = vset.pattern.permute.xlu1 %v1241_v3 }
 0x332   :  { %v482_v46 = vpop.permute.xlu0 %481  ;;  %v486_v47 = vpop.permute.xlu1 %485 }
 0x333   :  { %v493_v48 = vsel %vm112_vm3, %v482_v46, %v486_v47  ;;  %v1581_v47 = vld [vmem:[%s1696_s7] sm:$0xff] }
 0x334   :  { %v496_v10 = vsel %vm1400_vm4, %v493_v48, 0  ;;  %1183 = vmatprep.subr.msk.bf16.mxu0 %vm1400_vm4, %v493_v48  ;;  %v60_v48 = vadd.s32 2, %v1386_v16 }
 0x335   :  { %1100 = vmatpush3.bf16.msra.mxu0 %v496_v10  ;;  %v936_v10 = vld [vmem:[%s1700_s5] sm:$0xf] }
 0x336   :  { %v480_v8 = vpop.permute.xlu0 %479  ;;  %v484_v9 = vpop.permute.xlu1 %483  ;;  %vm62_vm13 = vcmp.lt.s32.totalorder %v60_v48, 16 }
 0x337   :  { %v489_v12 = vsel %vm112_vm3, %v480_v8, %v484_v9  ;;  %vm1590_vm14 = vmpackc.low %vm62_vm13, %vm62_vm13 }
 0x338   :  { %v495_v11 = vsel %vm1400_vm4, %v489_v12, 0  ;;  %1184 = vmatprep.subr.msk.bf16.mxu0 %vm1400_vm4, %v489_v12  ;;  %v753_v8 = vsel %vm1590_vm14, 65537, %v1241_v3 }
 0x339   :  { %1102 = vmatpush3.bf16.msra.mxu0 %v495_v11  ;;  %v757_v9 = vrot.slane %v753_v8, %v1393_v20 }
 0x33a   :  { %1103 = vmatprep.subr.bf16.mxu0 %v453_v37  ;;  %v464_v49 = vpop.permute.xlu0 %463  ;;  %v468_v50 = vpop.permute.xlu1 %467 }
 0x33b   :  { %v475_v51 = vsel %vm84_vm7, %v464_v49, %v468_v50  ;;  %vm758_vm1 = vcmp.ne.s16.totalorder %v757_v9, 0 }
 0x33c   :  { %v478_v54 = vsel %vm1426_vm8, %v475_v51, 0 }
 0x33d   :  { %1104 = vmatpush3.bf16.msra.mxu0 %v453_v37 }
 0x33e   :  { %1105 = vmatprep.subr.bf16.mxu0 %v452_v41  ;;  %v462_v52 = vpop.permute.xlu0 %461  ;;  %v466_v53 = vpop.permute.xlu1 %465 }
 0x33f   :  { %v471_v55 = vsel %vm84_vm7, %v462_v52, %v466_v53 }
 0x340   :  { %v477_v56 = vsel %vm1426_vm8, %v471_v55, 0 }
 0x341   :  { %1106 = vmatpush3.bf16.msra.mxu0 %v452_v41 }
 0x342   :  { %1185 = vmatprep.subr.msk.bf16.mxu0 %vm1426_vm8, %v475_v51 }
 0x345   :  { %1108 = vmatpush3.bf16.msra.mxu0 %v478_v54 }
 0x346   :  { %1186 = vmatprep.subr.msk.bf16.mxu0 %vm1426_vm8, %v471_v55 }
 0x349   :  { %1110 = vmatpush3.bf16.msra.mxu0 %v477_v56 }
 0x34a   :  { %1131 = vmatprep.subr.bf16.mxu0 %v1254_v22 }
 0x34b   :  { %v511_v58 = vpop.permute.xlu1 %510  ;;  %v507_v60 = vpop.permute.xlu0 %506 }
 0x34c   :  { %1112 = vmatmul.mubr.msk.bf16.vlgmr.msra.gmra.mxu0 %vm166_vm0, %v1240_v57 }
 0x34d   :  { %1147 = vmatprep.mubr.msk.bf16.mxu0 %vm1257_vm12, %v1254_v22 }
 0x34f   :  { %v499_v59 = vpop.permute.xlu1 %498  ;;  %v503_v62 = vpop.permute.xlu0 %502 }
 0x354   :  { %v600_v61 = vpop.permute.xlu1 %599  ;;  %v604_v2 = vpop.permute.xlu0 %603 }
 0x358   :  { %v592_v25 = vpop.permute.xlu0 %591 }
 0x359   :  { %v620_v63 = vpop.permute.xlu1 %619 }
 0x35d   :  { %v624_v4 = vpop.permute.xlu1 %623  ;;  %v612_v42 = vpop.permute.xlu0 %611 }
 0x362   :  { %v596_v21 = vpop.permute.xlu1 %595 }
 0x367   :  { %v616_v36 = vpop.permute.xlu1 %615 }
 0x40c   :  { %v1113_v0 = vpop.f32.mrf.mxu0 }
 0x40d   :  { %v572_v1 = vadd.f32 %v1113_v0, %v507_v60 }
 0x40e   :  { %v563_v5 = vpop.f32.mrf.mxu0 }
 0x40f   :  { %vm580_vm5 = vcmp.gt.f32.partialorder %v572_v1, 0.0  ;;  %v584_v6 = vmul.f32 0.2, %v572_v1  ;;  %v564_v7 = vadd.f32 %v563_v5, %v499_v59 }
 0x410   :  { %v1114_v14 = vpop.f32.mrf.mxu0 }
 0x411   :  { %v588_v15 = vsel %vm580_vm5, %v572_v1, %v584_v6  ;;  %v582_v17 = vmul.f32 0.2, %v564_v7  ;;  %v575_v18 = vadd.f32 %v1114_v14, %v511_v58  ;;  %vm578_vm9 = vcmp.gt.f32.partialorder %v564_v7, 0.0 }
 0x412   :  { %v566_v23 = vpop.f32.mrf.mxu0  ;;  %v608_v28 = vmul.f32 %v600_v61, %v588_v15 }
 0x413   :  { %vm581_vm10 = vcmp.gt.f32.partialorder %v575_v18, 0.0  ;;  %v585_v24 = vmul.f32 0.2, %v575_v18  ;;  %v567_v27 = vadd.f32 %v566_v23, %v503_v62  ;;  %v586_v30 = vsel %vm578_vm9, %v564_v7, %v582_v17 }
 0x414   :  { %v628_v37 = vadd.f32 %v620_v63, %v608_v28  ;;  %v606_v40 = vmul.f32 %v592_v25, %v586_v30 }
 0x415   :  { %v589_v29 = vsel %vm581_vm10, %v575_v18, %v585_v24  ;;  %v583_v31 = vmul.f32 0.2, %v567_v27  ;;  %vm579_vm11 = vcmp.gt.f32.partialorder %v567_v27, 0.0 }
 0x416   :  { %v609_v34 = vmul.f32 %v604_v2, %v589_v29  ;;  %v626_v45 = vadd.f32 %v612_v42, %v606_v40  ;;  %v633_v2 = vld [vmem:[%s1697_s2] sm:$0xf]  ;;  %s1258_s2 = smov 2  }
 0x417   :  { %v587_v35 = vsel %vm579_vm11, %v567_v27, %v583_v31 }
 0x418   :  { %v629_v38 = vadd.f32 %v624_v4, %v609_v34  ;;  %v607_v41 = vmul.f32 %v596_v21, %v587_v35  ;;  %v732_v4 = vld [vmem:[%s1698_s3] sm:$0xf]  ;;  %s1259_s3 = smov 98  }
 0x41a   :  { %v1546_v43 = vpack.c.bf16 %v629_v38, %v628_v37  ;;  %v627_v44 = vadd.f32 %v616_v36, %v607_v41  ;;  %v48_v41 = vadd.s32 4294967294, %v1386_v16 }
 0x41c   :  { %739 = vrot.lane.b32.xlu0 %v1546_v43, %s1255_s1  ;;  %735 = vrot.lane.b32.xlu1 %v1546_v43, %s1256_s21  ;;  %v1552_v46 = vpack.c.bf16 %v627_v44, %v626_v45 }
 0x420   :  { %737 = vrot.lane.b32.xlu0 %v1552_v46, %s1255_s1  ;;  %733 = vrot.lane.b32.xlu1 %v1552_v46, %s1256_s21 }
 0x424   :  { %660 = vrot.lane.b32.xlu0 %v1546_v43, %s1243_s18  ;;  %656 = vrot.lane.b32.xlu1 %v1546_v43, %s1242_s17 }
 0x428   :  { %658 = vrot.lane.b32.xlu0 %v1552_v46, %s1243_s18  ;;  %654 = vrot.lane.b32.xlu1 %v1552_v46, %s1242_s17 }
 0x42c   :  { %642 = vrot.lane.b32.xlu0 %v1546_v43, %s1245_s0  ;;  %638 = vrot.lane.b32.xlu1 %v1546_v43, %s1244_s19 }
 0x430   :  { %640 = vrot.lane.b32.xlu0 %v1552_v46, %s1245_s0  ;;  %636 = vrot.lane.b32.xlu1 %v1552_v46, %s1244_s19 }
 0x434   :  { %674 = vperm.xlu1 %1230, %v1581_v47   ;;  %722 = vperm.xlu0 %1231, %v1581_v47  }
 0x438   :  { %1232 = vset.pattern.permute.xlu1 %v1247_v13  ;;  %1234 = vset.pattern.permute.xlu0 %v1248_v33 }
 0x439   :  { %727 = vperm.xlu1 %1232, %v1581_v47  }
 0x43d   :  { %1233 = vset.pattern.permute.xlu1 %v1248_v33 }
 0x48e   :  { %v740_v13 = vpop.permute.xlu0 %739  ;;  %v736_v12 = vpop.permute.xlu1 %735 }
 0x48f   :  { %v748_v11 = vsel %vm741_vm15, %v736_v12, %v740_v13 }
 0x490   :  { %v760_v33 = vsel %vm758_vm1, %v748_v11, 0 }
 0x491   :  { %1132 = vmatpush3.bf16.msra.mxu0 %v760_v33 }
 0x492   :  { %v738_v49 = vpop.permute.xlu0 %737  ;;  %v734_v50 = vpop.permute.xlu1 %733  ;;  %1133 = vmatprep.subr.bf16.mxu0 %v1254_v22 }
 0x493   :  { %v744_v51 = vsel %vm741_vm15, %v734_v50, %v738_v49 }
 0x494   :  { %v759_v52 = vsel %vm758_vm1, %v744_v51, 0 }
 0x495   :  { %1134 = vmatpush3.bf16.msra.mxu0 %v759_v52 }
 0x496   :  { %v661_v53 = vpop.permute.xlu0 %660  ;;  %v657_v3 = vpop.permute.xlu1 %656  ;;  %1135 = vmatprep.subr.bf16.mxu0 %v1254_v22 }
 0x497   :  { %v668_v20 = vsel %vm112_vm3, %v657_v3, %v661_v53 }
 0x498   :  { %v671_v54 = vsel %vm1400_vm4, %v668_v20, 0 }
 0x499   :  { %1116 = vmatpush3.bf16.msra.mxu1 %v671_v54  ;;  %1136 = vmatpush3.bf16.msra.mxu0 %v671_v54 }
 0x49a   :  { %v659_v55 = vpop.permute.xlu0 %658  ;;  %v655_v56 = vpop.permute.xlu1 %654  ;;  %1117 = vmatprep.subr.bf16.mxu1 %v1254_v22  ;;  %1137 = vmatprep.subr.bf16.mxu0 %v1254_v22 }
 0x49b   :  { %v664_v57 = vsel %vm112_vm3, %v655_v56, %v659_v55 }
 0x49c   :  { %v670_v58 = vsel %vm1400_vm4, %v664_v57, 0  ;;  %vm49_vm4 = vcmp.ge.s32.totalorder %v48_v41, 0 }
 0x49d   :  { %1118 = vmatpush3.bf16.msra.mxu1 %v670_v58  ;;  %1138 = vmatpush3.bf16.msra.mxu0 %v670_v58  ;;  %vm836_vm5 = vmpackc.low %vm49_vm4, %vm49_vm4 }
 0x49e   :  { %1119 = vmatprep.subr.bf16.mxu1 %v1254_v22  ;;  %1139 = vmatprep.subr.bf16.mxu0 %v1254_v22  ;;  %v643_v59 = vpop.permute.xlu0 %642  ;;  %v639_v60 = vpop.permute.xlu1 %638 }
 0x49f   :  { %v650_v61 = vsel %vm84_vm7, %v639_v60, %v643_v59 }
 0x4a0   :  { %v653_v63 = vsel %vm1426_vm8, %v650_v61, 0 }
 0x4a1   :  { %1120 = vmatpush3.bf16.msra.mxu1 %v1546_v43  ;;  %1140 = vmatpush3.bf16.msra.mxu0 %v1546_v43 }
 0x4a2   :  { %1121 = vmatprep.subr.bf16.mxu1 %v1254_v22  ;;  %1141 = vmatprep.subr.bf16.mxu0 %v1254_v22  ;;  %v641_v26 = vpop.permute.xlu0 %640  ;;  %v637_v62 = vpop.permute.xlu1 %636 }
 0x4a3   :  { %v646_v0 = vsel %vm84_vm7, %v637_v62, %v641_v26 }
 0x4a4   :  { %v652_v1 = vsel %vm1426_vm8, %v646_v0, 0  ;;  %vm829_vm8 = vcmask 15360  }
 0x4a5   :  { %1122 = vmatpush3.bf16.msra.mxu1 %v1552_v46  ;;  %1142 = vmatpush3.bf16.msra.mxu0 %v1552_v46 }
 0x4a6   :  { %1123 = vmatprep.subr.bf16.mxu1 %v1254_v22  ;;  %1143 = vmatprep.subr.bf16.mxu0 %v1254_v22 }
 0x4a9   :  { %1124 = vmatpush3.bf16.msra.mxu1 %v653_v63  ;;  %1144 = vmatpush3.bf16.msra.mxu0 %v653_v63 }
 0x4aa   :  { %1125 = vmatprep.subr.bf16.mxu1 %v1254_v22  ;;  %1145 = vmatprep.subr.bf16.mxu0 %v1254_v22 }
 0x4ad   :  { %1126 = vmatpush3.bf16.msra.mxu1 %v652_v1  ;;  %1146 = vmatpush3.bf16.msra.mxu0 %v652_v1 }
 0x4ae   :  { %1151 = vmatprep.subr.bf16.mxu1 %v1254_v22 }
 0x4af   :  { %v675_v39 = vpop.permute.xlu1 %674  ;;  %v723_v14 = vpop.permute.xlu0 %722 }
 0x4b0   :  { %1128 = vmatmul.mubr.msk.bf16.vlgmr.msra.gmra.mxu1 %vm166_vm0, %v633_v2  ;;  %1148 = vmatmul.mubr.bf16.vlgmr.msra.gmra.mxu0 %v732_v4  ;;  %vm870_vm0 = vcmask 1043456  }
 0x4b1   :  { %1159 = vmatprep.mubr.msk.bf16.mxu1 %vm1257_vm12, %v1254_v22 }
 0x4b4   :  { %v728_v21 = vpop.permute.xlu1 %727 }
 0x570   :  { %v714_v5 = vpop.f32.mrf.mxu1  ;;  %v795_v6 = vpop.f32.mrf.mxu0 }
 0x571   :  { %v796_v7 = vadd.f32 %v795_v6, %v675_v39  ;;  %v715_v25 = vadd.f32 %v714_v5, %v675_v39 }
 0x572   :  { %v1149_v15 = vpop.f32.mrf.mxu0  ;;  %v1129_v17 = vpop.f32.mrf.mxu1 }
 0x573   :  { %v801_v18 = vmax.f32 %v796_v7, 0.0  ;;  %v720_v31 = vmax.f32 %v715_v25, 0.0 }
 0x574   :  { %v798_v23 = vpop.f32.mrf.mxu0  ;;  %v717_v24 = vpop.f32.mrf.mxu1 }
 0x575   :  { %v802_v27 = vmul.f32 %v801_v18, %v723_v14  ;;  %v725_v35 = vmul.f32 %v723_v14, %v720_v31 }
 0x576   :  { %v1150_v28 = vpop.f32.mrf.mxu0  ;;  %v1130_v29 = vpop.f32.mrf.mxu1 }
 0x577   :  { %v803_v30 = vadd.f32 %v802_v27, %v728_v21  ;;  %v730_v36 = vadd.f32 %v728_v21, %v725_v35 }
 0x579   :  { %v804_v34 = vpack.c.bf16 %v803_v30, %v803_v30  ;;  %v731_v37 = vpack.c.bf16 %v730_v36, %v730_v36 }
 0x57b   :  { %849 = vrot.lane.b32.xlu0 %v804_v34, %s1243_s18  ;;  %847 = vrot.lane.b32.xlu1 %v804_v34, %s1242_s17  ;;  %v866_v55 = vrot.slane %v731_v37, 4 }
 0x57f   :  { %840 = vrot.lane.b32.xlu0 %v804_v34, %s1245_s0  ;;  %838 = vrot.lane.b32.xlu1 %v804_v34, %s1244_s19 }
 0x583   :  { %827 = vrot.lane.b32.xlu0 %v804_v34, %s1258_s2  ;;  %825 = vrot.lane.b32.xlu1 %v804_v34, %s1259_s3 }
 0x587   :  { %817 = vrot.lane.b32.xlu0 %v731_v37, %s1243_s18  ;;  %815 = vrot.lane.b32.xlu1 %v731_v37, %s1242_s17 }
 0x58b   :  { %808 = vrot.lane.b32.xlu0 %v731_v37, %s1245_s0  ;;  %806 = vrot.lane.b32.xlu1 %v731_v37, %s1244_s19 }
 0x58f   :  { %858 = vrot.lane.b32.xlu0 %v731_v37, %s1255_s1  ;;  %856 = vrot.lane.b32.xlu1 %v731_v37, %s1256_s21 }
 0x593   :  { %884 = vperm.xlu1 %1233, %v1581_v47   ;;  %v869_v47 = vrot.slane %v804_v34, 4 }
 0x5ed   :  { %v850_v38 = vpop.permute.xlu0 %849  ;;  %v848_v40 = vpop.permute.xlu1 %847 }
 0x5ee   :  { %v853_v42 = vsel %vm112_vm3, %v848_v40, %v850_v38 }
 0x5ef   :  { %v855_v43 = vsel %vm1389_vm2, %v853_v42, 0 }
 0x5f0   :  { %v892_v44 = vsel %vm870_vm0, %v855_v43, 0 }
 0x5f1   :  { %v841_v45 = vpop.permute.xlu0 %840  ;;  %1152 = vmatpush3.bf16.msra.mxu1 %v892_v44  ;;  %v839_v46 = vpop.permute.xlu1 %838 }
 0x5f2   :  { %v844_v48 = vsel %vm84_vm7, %v839_v46, %v841_v45  ;;  %1153 = vmatprep.subr.bf16.mxu1 %v1254_v22 }
 0x5f3   :  { %v846_v8 = vsel %vm1410_vm6, %v844_v48, 0 }
 0x5f4   :  { %v881_v16 = vsel %vm870_vm0, %v846_v8, %v869_v47 }
 0x5f5   :  { %v828_v9 = vpop.permute.xlu0 %827  ;;  %v826_v13 = vpop.permute.xlu1 %825  ;;  %1154 = vmatpush3.bf16.msra.mxu1 %v881_v16 }
 0x5f6   :  { %v832_v12 = vsel %vm829_vm8, %v826_v13, %v828_v9  ;;  %1155 = vmatprep.subr.bf16.mxu1 %v1254_v22 }
 0x5f7   :  { %v837_v11 = vsel %vm836_vm5, %v832_v12, 0 }
 0x5f8   :  { %v868_v50 = vrot.slane %v837_v11, 4 }
 0x5f9   :  { %v818_v33 = vpop.permute.xlu0 %817  ;;  %v816_v49 = vpop.permute.xlu1 %815 }
 0x5fa   :  { %v821_v51 = vsel %vm112_vm3, %v816_v49, %v818_v33  ;;  %vm934_vm3 = vcmask 261120  }
 0x5fb   :  { %v823_v52 = vsel %vm1389_vm2, %v821_v51, 0  ;;  %vm887_vm2 = vcmask 457728  }
 0x5fc   :  { %v877_v53 = vsel %vm870_vm0, %v823_v52, %v868_v50 }
 0x5fd   :  { %v809_v3 = vpop.permute.xlu0 %808  ;;  %v807_v20 = vpop.permute.xlu1 %806  ;;  %1156 = vmatpush3.bf16.msra.mxu1 %v877_v53 }
 0x5fe   :  { %v812_v54 = vsel %vm84_vm7, %v807_v20, %v809_v3  ;;  %1157 = vmatprep.subr.bf16.mxu1 %v1254_v22 }
 0x5ff   :  { %v814_v56 = vsel %vm1410_vm6, %v812_v54, 0 }
 0x600   :  { %v873_v57 = vsel %vm870_vm0, %v814_v56, %v866_v55 }
 0x601   :  { %v859_v58 = vpop.permute.xlu0 %858  ;;  %v857_v59 = vpop.permute.xlu1 %856  ;;  %1158 = vmatpush3.bf16.msra.mxu1 %v873_v57 }
 0x602   :  { %v862_v60 = vsel %vm741_vm15, %v857_v59, %v859_v58  ;;  %1163 = vmatprep.subr.bf16.mxu1 %v1254_v22 }
 0x603   :  { %v864_v32 = vsel %vm1590_vm14, %v862_v60, 0 }
 0x604   :  { %1160 = vmatmul.mubr.msk.bf16.vlgmr.msra.gmra.mxu1 %vm887_vm2, %v865_v19  ;;  %v938_v61 = vrot.slane %v864_v32, 4 }
 0x605   :  { %1164 = vmatpush3.bf16.msra.mxu1 %v892_v44  ;;  %1171 = vmatprep.mubr.msk.bf16.mxu1 %vm1257_vm12, %v1254_v22 }
 0x606   :  { %1165 = vmatprep.subr.bf16.mxu1 %v1254_v22  ;;  %v940_v26 = vsel %vm870_vm0, %v823_v52, %v938_v61 }
 0x609   :  { %1166 = vmatpush3.bf16.msra.mxu1 %v881_v16 }
 0x60a   :  { %1167 = vmatprep.subr.bf16.mxu1 %v1254_v22 }
 0x60d   :  { %1168 = vmatpush3.bf16.msra.mxu1 %v940_v26 }
 0x60e   :  { %1169 = vmatprep.subr.bf16.mxu1 %v1254_v22  ;;  %v885_v62 = vpop.permute.xlu1 %884 }
 0x611   :  { %1170 = vmatpush3.bf16.msra.mxu1 %v873_v57 }
 0x614   :  { %1172 = vmatmul.mubr.msk.bf16.vlgmr.msra.gmra.mxu1 %vm887_vm2, %v936_v10 }
 0x6c4   :  { %v928_v63 = vpop.f32.mrf.mxu1 }
 0x6c5   :  { %v929_v0 = vadd.f32 %v928_v63, %v885_v62 }
 0x6c6   :  { %v1161_v1 = vpop.f32.mrf.mxu1 }
 0x6c7   :  { %935 = vst.msk [vmem:[%s1701_s8] sm:$0xff] %vm934_vm3, %v929_v0 }
 0x6c8   :  { %v931_v2 = vpop.f32.mrf.mxu1 }
 0x6ca   :  { %v1162_v4 = vpop.f32.mrf.mxu1 }
 0x6d4   :  { %v979_v39 = vpop.f32.mrf.mxu1 }
 0x6d5   :  { %v980_v22 = vadd.f32 %v979_v39, %v885_v62 }
 0x6d6   :  { %v1173_v5 = vpop.f32.mrf.mxu1 }
 0x6d7   :  { %985 = vst.msk [vmem:[%s1702_s9] sm:$0xff] %vm934_vm3, %v980_v22 }
 0x6d8   :  { %v982_v6 = vpop.f32.mrf.mxu1 }
 0x6da   :  { %v1174_v7 = vpop.f32.mrf.mxu1 }

</bundles_post_ra>
